<compile_context>
chip_gen: v7x
topology: tpu7x:2x2x1
jax: 0.10.0
libtpu: 0.0.40
codegen_flags: <defaults>
</compile_context>

<pallas_src>
import jax
import jax.numpy as jnp
from jax.experimental import pallas as pl
from jax.experimental.pallas import tpu as pltpu

NOISE = 10      # noise_size
HIDDEN = 100    # each hidden layer width
NVAR = 5        # len(output_size) == 5, every category size == 1
BN_EPS = 1e-5
LANE = 128      # TPU lane width: every feature axis is padded to this


def _lgn_kernel(noise_ref,
                w1_ref, b1_ref,
                w2_ref, b2_ref, g2_ref, be2_ref,
                w3_ref, b3_ref, g3_ref, be3_ref,
                w4_ref, b4_ref, g4_ref, be4_ref,
                wout_ref, bout_ref,
                adjT_ref, wa_ref,
                final_ref, out10_ref):
    """Whole forward hot path in one VMEM-resident block (single grid point)."""
    inv_b = 1.0 / noise_ref.shape[0]          # static batch size -> compile-time const

    # hidden layer 1: Linear + ReLU (no BN on the first hidden layer)
    x = noise_ref[...]
    h = jnp.dot(x, w1_ref[...], preferred_element_type=jnp.float32) + b1_ref[...]
    h = jnp.maximum(h, 0.0)

    def lin_bn_relu(h, w_ref, b_ref, g_ref, be_ref):
        z = jnp.dot(h, w_ref[...], preferred_element_type=jnp.float32) + b_ref[...]
        # BatchNorm1d (training): biased batch stats, one-pass sum / sum-of-squares
        # so the two XLU reductions are independent.
        s = jnp.sum(z, axis=0, keepdims=True)
        ss = jnp.sum(z * z, axis=0, keepdims=True)
        mean = s * inv_b
        var = jnp.maximum(ss * inv_b - mean * mean, 0.0)
        zh = (z - mean) * jax.lax.rsqrt(var + BN_EPS)
        return jnp.maximum(zh * g_ref[...] + be_ref[...], 0.0)

    h = lin_bn_relu(h, w2_ref, b2_ref, g2_ref, be2_ref)
    h = lin_bn_relu(h, w3_ref, b3_ref, g3_ref, be3_ref)
    h = lin_bn_relu(h, w4_ref, b4_ref, g4_ref, be4_ref)

    # MultiCategorical head: 5 x Linear(100, 1) fused into one lane-padded matmul.
    logits = jnp.dot(h, wout_ref[...], preferred_element_type=jnp.float32) + bout_ref[...]
    # softmax over a singleton category == exp(0) == 1.0 exactly.  Skip the EUP
    # exp; keep (logits - logits) so NaN/Inf from the MLP still propagate.
    out10 = (logits - logits) + 1.0
    out10_ref[...] = out10

    # final = (out10 + Wa) @ adj_new1^T - Wa   (adjT_ref already holds adj_new1^T,
    # zero-padded, so pad lanes do not contaminate the first NVAR outputs).
    wa = wa_ref[0]
    wa_row = jnp.full((1, LANE), wa, jnp.float32)   # single splat, reused twice
    final_ref[...] = jnp.dot(out10 + wa_row, adjT_ref[...],
                             preferred_element_type=jnp.float32) - wa_row


def _pad2(x, rows, cols):
    r, c = x.shape
    return jnp.pad(x, ((0, rows - r), (0, cols - c)))


@jax.jit
def lgn_forward(noise, params):
    B = noise.shape[0]

    # ---- glue: adjacency preprocessing (sinh + tiny dense inverse) ----
    adj_A1 = jnp.sinh(3.0 * params["adj_A"])
    adj_new1 = jnp.linalg.inv(jnp.eye(NVAR, dtype=jnp.float32) - adj_A1.T)
    adjT = adj_new1.T          # kernel does (out10 + Wa) @ adj_new1^T - Wa

    # ---- lane-pad every feature axis to 128 (zero pad -> results unchanged) ----
    noise_p = _pad2(noise, B, LANE)
    w1 = _pad2(params["w1"], LANE, LANE); b1 = _pad2(params["b1"], 1, LANE)
    w2 = _pad2(params["w2"], LANE, LANE); b2 = _pad2(params["b2"], 1, LANE)
    g2 = _pad2(params["g2"], 1, LANE);    be2 = _pad2(params["be2"], 1, LANE)
    w3 = _pad2(params["w3"], LANE, LANE); b3 = _pad2(params["b3"], 1, LANE)
    g3 = _pad2(params["g3"], 1, LANE);    be3 = _pad2(params["be3"], 1, LANE)
    w4 = _pad2(params["w4"], LANE, LANE); b4 = _pad2(params["b4"], 1, LANE)
    g4 = _pad2(params["g4"], 1, LANE);    be4 = _pad2(params["be4"], 1, LANE)
    wout = _pad2(params["wout"], LANE, LANE); bout = _pad2(params["bout"], 1, LANE)
    adjT_p = _pad2(adjT, LANE, LANE)

    vmem = pl.BlockSpec(memory_space=pltpu.MemorySpace.VMEM)
    smem = pl.BlockSpec(memory_space=pltpu.MemorySpace.SMEM)

    inputs = (noise_p,
              w1, b1,
              w2, b2, g2, be2,
              w3, b3, g3, be3,
              w4, b4, g4, be4,
              wout, bout,
              adjT_p, params["Wa"])
    in_specs = [vmem] * (len(inputs) - 1) + [smem]

    final_p, out10_p = pl.pallas_call(
        _lgn_kernel,
        out_shape=(jax.ShapeDtypeStruct((B, LANE), jnp.float32),   # lane-dense slabs
                   jax.ShapeDtypeStruct((B, LANE), jnp.float32)),
        in_specs=in_specs,
        out_specs=(vmem, vmem),
    )(*inputs)

    # slice the lane padding off
    return final_p[:, :NVAR], adj_A1, out10_p[:, :NVAR], params["Wa"]


def init_params(key):
    """Deterministic synthetic parameters matching the module's __init__ shapes."""
    ks = jax.random.split(key, 11)

    def linear(kw, kb, fan_in, fan_out):
        bound = 1.0 / jnp.sqrt(jnp.float32(fan_in))
        w = jax.random.uniform(kw, (fan_in, fan_out), jnp.float32, -bound, bound)
        b = jax.random.uniform(kb, (1, fan_out), jnp.float32, -bound, bound)
        return w, b

    w1, b1 = linear(ks[0], ks[1], NOISE, HIDDEN)
    w2, b2 = linear(ks[2], ks[3], HIDDEN, HIDDEN)
    w3, b3 = linear(ks[4], ks[5], HIDDEN, HIDDEN)
    w4, b4 = linear(ks[6], ks[7], HIDDEN, HIDDEN)
    # 5 fused Linear(100, 1) heads -> (100, 5)
    wout, bout = linear(ks[8], ks[9], HIDDEN, NVAR)

    # BatchNorm1d defaults: gamma = 1, beta = 0.
    ones = jnp.ones((1, HIDDEN), jnp.float32)
    zeros = jnp.zeros((1, HIDDEN), jnp.float32)

    # adj_A parameter (small values so I - sinh(3A)^T stays well conditioned),
    # zero diagonal (DAG-style).
    adj_A = 0.05 * jax.random.uniform(ks[10], (NVAR, NVAR), jnp.float32, -1.0, 1.0)
    adj_A = adj_A * (1.0 - jnp.eye(NVAR, dtype=jnp.float32))

    # Wa is initialized to zeros(1) in the module.
    Wa = jnp.zeros((1,), jnp.float32)

    return dict(w1=w1, b1=b1,
                w2=w2, b2=b2, g2=ones, be2=zeros,
                w3=w3, b3=b3, g3=ones, be3=zeros,
                w4=w4, b4=b4, g4=ones, be4=zeros,
                wout=wout, bout=bout,
                adj_A=adj_A, Wa=Wa)


if __name__ == "__main__":
    key = jax.random.PRNGKey(0)
    pkey, nkey = jax.random.split(key)

    params = init_params(pkey)
    batch = 32                                   # multiple of 8 sublanes
    noise = jax.random.normal(nkey, (batch, NOISE), jnp.float32)

    final_output, adj_A1, output_10, Wa = lgn_forward(noise, params)
    jax.block_until_ready((final_output, adj_A1, output_10, Wa))

    assert final_output.shape == (batch, NVAR)
    assert adj_A1.shape == (NVAR, NVAR)
    assert output_10.shape == (batch, NVAR)
    assert Wa.shape == (1,)
    # sanity: softmax over singleton categories is exactly 1.0
    assert bool(jnp.all(output_10 == 1.0))
    print("KERNEL_OK")
</pallas_src>

<mosaic_0001>
module attributes {stable_mosaic.version = 11 : i64} {
  func.func @_lgn_kernel(%arg0: memref<32x128xf32, #tpu.memory_space<vmem>>, %arg1: memref<128x128xf32, #tpu.memory_space<vmem>>, %arg2: memref<1x128xf32, #tpu.memory_space<vmem>>, %arg3: memref<128x128xf32, #tpu.memory_space<vmem>>, %arg4: memref<1x128xf32, #tpu.memory_space<vmem>>, %arg5: memref<1x128xf32, #tpu.memory_space<vmem>>, %arg6: memref<1x128xf32, #tpu.memory_space<vmem>>, %arg7: memref<128x128xf32, #tpu.memory_space<vmem>>, %arg8: memref<1x128xf32, #tpu.memory_space<vmem>>, %arg9: memref<1x128xf32, #tpu.memory_space<vmem>>, %arg10: memref<1x128xf32, #tpu.memory_space<vmem>>, %arg11: memref<128x128xf32, #tpu.memory_space<vmem>>, %arg12: memref<1x128xf32, #tpu.memory_space<vmem>>, %arg13: memref<1x128xf32, #tpu.memory_space<vmem>>, %arg14: memref<1x128xf32, #tpu.memory_space<vmem>>, %arg15: memref<128x128xf32, #tpu.memory_space<vmem>>, %arg16: memref<1x128xf32, #tpu.memory_space<vmem>>, %arg17: memref<128x128xf32, #tpu.memory_space<vmem>>, %arg18: memref<1xf32, #tpu.memory_space<smem>>, %arg19: memref<32x128xf32, #tpu.memory_space<vmem>>, %arg20: memref<32x128xf32, #tpu.memory_space<vmem>>) attributes {dimension_semantics = [], scalar_prefetch = 0 : i64, scratch_operands = 0 : i64, tpu.core_type = #tpu.core_type<tc>} {
    %c0 = arith.constant 0 : index
    %c0_0 = arith.constant 0 : index
    %0 = vector.load %arg0[%c0, %c0_0] : memref<32x128xf32, #tpu.memory_space<vmem>>, vector<32x128xf32>
    %c0_1 = arith.constant 0 : index
    %c0_2 = arith.constant 0 : index
    %1 = vector.load %arg1[%c0_1, %c0_2] : memref<128x128xf32, #tpu.memory_space<vmem>>, vector<128x128xf32>
    %cst = arith.constant dense<0.000000e+00> : vector<32x128xf32>
    %2 = tpu.matmul %0, %1, %cst {dimension_numbers = #tpu.dot_dimension_numbers<[1], [0], [0], [1], [0, 0, 1, 1], [], []>} : vector<32x128xf32>, vector<128x128xf32>, vector<32x128xf32> -> vector<32x128xf32>
    %c0_3 = arith.constant 0 : index
    %c0_4 = arith.constant 0 : index
    %3 = vector.load %arg2[%c0_3, %c0_4] : memref<1x128xf32, #tpu.memory_space<vmem>>, vector<1x128xf32>
    %4 = vector.broadcast %3 : vector<1x128xf32> to vector<32x128xf32>
    %5 = arith.addf %2, %4 : vector<32x128xf32>
    %cst_5 = arith.constant 0.000000e+00 : f32
    %6 = vector.broadcast %cst_5 : f32 to vector<32x128xf32>
    %7 = arith.maximumf %5, %6 : vector<32x128xf32>
    %c0_6 = arith.constant 0 : index
    %c0_7 = arith.constant 0 : index
    %8 = vector.load %arg3[%c0_6, %c0_7] : memref<128x128xf32, #tpu.memory_space<vmem>>, vector<128x128xf32>
    %cst_8 = arith.constant dense<0.000000e+00> : vector<32x128xf32>
    %9 = tpu.matmul %7, %8, %cst_8 {dimension_numbers = #tpu.dot_dimension_numbers<[1], [0], [0], [1], [0, 0, 1, 1], [], []>} : vector<32x128xf32>, vector<128x128xf32>, vector<32x128xf32> -> vector<32x128xf32>
    %c0_9 = arith.constant 0 : index
    %c0_10 = arith.constant 0 : index
    %10 = vector.load %arg4[%c0_9, %c0_10] : memref<1x128xf32, #tpu.memory_space<vmem>>, vector<1x128xf32>
    %11 = vector.broadcast %10 : vector<1x128xf32> to vector<32x128xf32>
    %12 = arith.addf %9, %11 : vector<32x128xf32>
    %cst_11 = arith.constant dense<0.000000e+00> : vector<128xf32>
    %13 = vector.multi_reduction <add>, %12, %cst_11 [0] : vector<32x128xf32> to vector<128xf32>
    %14 = vector.shape_cast %13 : vector<128xf32> to vector<1x128xf32>
    %15 = arith.mulf %12, %12 : vector<32x128xf32>
    %cst_12 = arith.constant dense<0.000000e+00> : vector<128xf32>
    %16 = vector.multi_reduction <add>, %15, %cst_12 [0] : vector<32x128xf32> to vector<128xf32>
    %17 = vector.shape_cast %16 : vector<128xf32> to vector<1x128xf32>
    %cst_13 = arith.constant 3.125000e-02 : f32
    %18 = vector.broadcast %cst_13 : f32 to vector<1x128xf32>
    %19 = arith.mulf %14, %18 : vector<1x128xf32>
    %cst_14 = arith.constant 3.125000e-02 : f32
    %20 = vector.broadcast %cst_14 : f32 to vector<1x128xf32>
    %21 = arith.mulf %17, %20 : vector<1x128xf32>
    %22 = arith.mulf %19, %19 : vector<1x128xf32>
    %23 = arith.subf %21, %22 : vector<1x128xf32>
    %cst_15 = arith.constant 0.000000e+00 : f32
    %24 = vector.broadcast %cst_15 : f32 to vector<1x128xf32>
    %25 = arith.maximumf %23, %24 : vector<1x128xf32>
    %26 = vector.broadcast %19 : vector<1x128xf32> to vector<32x128xf32>
    %27 = arith.subf %12, %26 : vector<32x128xf32>
    %cst_16 = arith.constant 9.99999974E-6 : f32
    %28 = vector.broadcast %cst_16 : f32 to vector<1x128xf32>
    %29 = arith.addf %25, %28 : vector<1x128xf32>
    %30 = math.rsqrt %29 : vector<1x128xf32>
    %31 = vector.broadcast %30 : vector<1x128xf32> to vector<32x128xf32>
    %32 = arith.mulf %27, %31 : vector<32x128xf32>
    %c0_17 = arith.constant 0 : index
    %c0_18 = arith.constant 0 : index
    %33 = vector.load %arg5[%c0_17, %c0_18] : memref<1x128xf32, #tpu.memory_space<vmem>>, vector<1x128xf32>
    %34 = vector.broadcast %33 : vector<1x128xf32> to vector<32x128xf32>
    %35 = arith.mulf %32, %34 : vector<32x128xf32>
    %c0_19 = arith.constant 0 : index
    %c0_20 = arith.constant 0 : index
    %36 = vector.load %arg6[%c0_19, %c0_20] : memref<1x128xf32, #tpu.memory_space<vmem>>, vector<1x128xf32>
    %37 = vector.broadcast %36 : vector<1x128xf32> to vector<32x128xf32>
    %38 = arith.addf %35, %37 : vector<32x128xf32>
    %cst_21 = arith.constant 0.000000e+00 : f32
    %39 = vector.broadcast %cst_21 : f32 to vector<32x128xf32>
    %40 = arith.maximumf %38, %39 : vector<32x128xf32>
    %c0_22 = arith.constant 0 : index
    %c0_23 = arith.constant 0 : index
    %41 = vector.load %arg7[%c0_22, %c0_23] : memref<128x128xf32, #tpu.memory_space<vmem>>, vector<128x128xf32>
    %cst_24 = arith.constant dense<0.000000e+00> : vector<32x128xf32>
    %42 = tpu.matmul %40, %41, %cst_24 {dimension_numbers = #tpu.dot_dimension_numbers<[1], [0], [0], [1], [0, 0, 1, 1], [], []>} : vector<32x128xf32>, vector<128x128xf32>, vector<32x128xf32> -> vector<32x128xf32>
    %c0_25 = arith.constant 0 : index
    %c0_26 = arith.constant 0 : index
    %43 = vector.load %arg8[%c0_25, %c0_26] : memref<1x128xf32, #tpu.memory_space<vmem>>, vector<1x128xf32>
    %44 = vector.broadcast %43 : vector<1x128xf32> to vector<32x128xf32>
    %45 = arith.addf %42, %44 : vector<32x128xf32>
    %cst_27 = arith.constant dense<0.000000e+00> : vector<128xf32>
    %46 = vector.multi_reduction <add>, %45, %cst_27 [0] : vector<32x128xf32> to vector<128xf32>
    %47 = vector.shape_cast %46 : vector<128xf32> to vector<1x128xf32>
    %48 = arith.mulf %45, %45 : vector<32x128xf32>
    %cst_28 = arith.constant dense<0.000000e+00> : vector<128xf32>
    %49 = vector.multi_reduction <add>, %48, %cst_28 [0] : vector<32x128xf32> to vector<128xf32>
    %50 = vector.shape_cast %49 : vector<128xf32> to vector<1x128xf32>
    %cst_29 = arith.constant 3.125000e-02 : f32
    %51 = vector.broadcast %cst_29 : f32 to vector<1x128xf32>
    %52 = arith.mulf %47, %51 : vector<1x128xf32>
    %cst_30 = arith.constant 3.125000e-02 : f32
    %53 = vector.broadcast %cst_30 : f32 to vector<1x128xf32>
    %54 = arith.mulf %50, %53 : vector<1x128xf32>
    %55 = arith.mulf %52, %52 : vector<1x128xf32>
    %56 = arith.subf %54, %55 : vector<1x128xf32>
    %cst_31 = arith.constant 0.000000e+00 : f32
    %57 = vector.broadcast %cst_31 : f32 to vector<1x128xf32>
    %58 = arith.maximumf %56, %57 : vector<1x128xf32>
    %59 = vector.broadcast %52 : vector<1x128xf32> to vector<32x128xf32>
    %60 = arith.subf %45, %59 : vector<32x128xf32>
    %cst_32 = arith.constant 9.99999974E-6 : f32
    %61 = vector.broadcast %cst_32 : f32 to vector<1x128xf32>
    %62 = arith.addf %58, %61 : vector<1x128xf32>
    %63 = math.rsqrt %62 : vector<1x128xf32>
    %64 = vector.broadcast %63 : vector<1x128xf32> to vector<32x128xf32>
    %65 = arith.mulf %60, %64 : vector<32x128xf32>
    %c0_33 = arith.constant 0 : index
    %c0_34 = arith.constant 0 : index
    %66 = vector.load %arg9[%c0_33, %c0_34] : memref<1x128xf32, #tpu.memory_space<vmem>>, vector<1x128xf32>
    %67 = vector.broadcast %66 : vector<1x128xf32> to vector<32x128xf32>
    %68 = arith.mulf %65, %67 : vector<32x128xf32>
    %c0_35 = arith.constant 0 : index
    %c0_36 = arith.constant 0 : index
    %69 = vector.load %arg10[%c0_35, %c0_36] : memref<1x128xf32, #tpu.memory_space<vmem>>, vector<1x128xf32>
    %70 = vector.broadcast %69 : vector<1x128xf32> to vector<32x128xf32>
    %71 = arith.addf %68, %70 : vector<32x128xf32>
    %cst_37 = arith.constant 0.000000e+00 : f32
    %72 = vector.broadcast %cst_37 : f32 to vector<32x128xf32>
    %73 = arith.maximumf %71, %72 : vector<32x128xf32>
    %c0_38 = arith.constant 0 : index
    %c0_39 = arith.constant 0 : index
    %74 = vector.load %arg11[%c0_38, %c0_39] : memref<128x128xf32, #tpu.memory_space<vmem>>, vector<128x128xf32>
    %cst_40 = arith.constant dense<0.000000e+00> : vector<32x128xf32>
    %75 = tpu.matmul %73, %74, %cst_40 {dimension_numbers = #tpu.dot_dimension_numbers<[1], [0], [0], [1], [0, 0, 1, 1], [], []>} : vector<32x128xf32>, vector<128x128xf32>, vector<32x128xf32> -> vector<32x128xf32>
    %c0_41 = arith.constant 0 : index
    %c0_42 = arith.constant 0 : index
    %76 = vector.load %arg12[%c0_41, %c0_42] : memref<1x128xf32, #tpu.memory_space<vmem>>, vector<1x128xf32>
    %77 = vector.broadcast %76 : vector<1x128xf32> to vector<32x128xf32>
    %78 = arith.addf %75, %77 : vector<32x128xf32>
    %cst_43 = arith.constant dense<0.000000e+00> : vector<128xf32>
    %79 = vector.multi_reduction <add>, %78, %cst_43 [0] : vector<32x128xf32> to vector<128xf32>
    %80 = vector.shape_cast %79 : vector<128xf32> to vector<1x128xf32>
    %81 = arith.mulf %78, %78 : vector<32x128xf32>
    %cst_44 = arith.constant dense<0.000000e+00> : vector<128xf32>
    %82 = vector.multi_reduction <add>, %81, %cst_44 [0] : vector<32x128xf32> to vector<128xf32>
    %83 = vector.shape_cast %82 : vector<128xf32> to vector<1x128xf32>
    %cst_45 = arith.constant 3.125000e-02 : f32
    %84 = vector.broadcast %cst_45 : f32 to vector<1x128xf32>
    %85 = arith.mulf %80, %84 : vector<1x128xf32>
    %cst_46 = arith.constant 3.125000e-02 : f32
    %86 = vector.broadcast %cst_46 : f32 to vector<1x128xf32>
    %87 = arith.mulf %83, %86 : vector<1x128xf32>
    %88 = arith.mulf %85, %85 : vector<1x128xf32>
    %89 = arith.subf %87, %88 : vector<1x128xf32>
    %cst_47 = arith.constant 0.000000e+00 : f32
    %90 = vector.broadcast %cst_47 : f32 to vector<1x128xf32>
    %91 = arith.maximumf %89, %90 : vector<1x128xf32>
    %92 = vector.broadcast %85 : vector<1x128xf32> to vector<32x128xf32>
    %93 = arith.subf %78, %92 : vector<32x128xf32>
    %cst_48 = arith.constant 9.99999974E-6 : f32
    %94 = vector.broadcast %cst_48 : f32 to vector<1x128xf32>
    %95 = arith.addf %91, %94 : vector<1x128xf32>
    %96 = math.rsqrt %95 : vector<1x128xf32>
    %97 = vector.broadcast %96 : vector<1x128xf32> to vector<32x128xf32>
    %98 = arith.mulf %93, %97 : vector<32x128xf32>
    %c0_49 = arith.constant 0 : index
    %c0_50 = arith.constant 0 : index
    %99 = vector.load %arg13[%c0_49, %c0_50] : memref<1x128xf32, #tpu.memory_space<vmem>>, vector<1x128xf32>
    %100 = vector.broadcast %99 : vector<1x128xf32> to vector<32x128xf32>
    %101 = arith.mulf %98, %100 : vector<32x128xf32>
    %c0_51 = arith.constant 0 : index
    %c0_52 = arith.constant 0 : index
    %102 = vector.load %arg14[%c0_51, %c0_52] : memref<1x128xf32, #tpu.memory_space<vmem>>, vector<1x128xf32>
    %103 = vector.broadcast %102 : vector<1x128xf32> to vector<32x128xf32>
    %104 = arith.addf %101, %103 : vector<32x128xf32>
    %cst_53 = arith.constant 0.000000e+00 : f32
    %105 = vector.broadcast %cst_53 : f32 to vector<32x128xf32>
    %106 = arith.maximumf %104, %105 : vector<32x128xf32>
    %c0_54 = arith.constant 0 : index
    %c0_55 = arith.constant 0 : index
    %107 = vector.load %arg15[%c0_54, %c0_55] : memref<128x128xf32, #tpu.memory_space<vmem>>, vector<128x128xf32>
    %cst_56 = arith.constant dense<0.000000e+00> : vector<32x128xf32>
    %108 = tpu.matmul %106, %107, %cst_56 {dimension_numbers = #tpu.dot_dimension_numbers<[1], [0], [0], [1], [0, 0, 1, 1], [], []>} : vector<32x128xf32>, vector<128x128xf32>, vector<32x128xf32> -> vector<32x128xf32>
    %c0_57 = arith.constant 0 : index
    %c0_58 = arith.constant 0 : index
    %109 = vector.load %arg16[%c0_57, %c0_58] : memref<1x128xf32, #tpu.memory_space<vmem>>, vector<1x128xf32>
    %110 = vector.broadcast %109 : vector<1x128xf32> to vector<32x128xf32>
    %111 = arith.addf %108, %110 : vector<32x128xf32>
    %112 = arith.subf %111, %111 : vector<32x128xf32>
    %cst_59 = arith.constant 1.000000e+00 : f32
    %113 = vector.broadcast %cst_59 : f32 to vector<32x128xf32>
    %114 = arith.addf %112, %113 : vector<32x128xf32>
    %c0_60 = arith.constant 0 : index
    %c0_61 = arith.constant 0 : index
    %115 = vector.load %arg20[%c0_60, %c0_61] : memref<32x128xf32, #tpu.memory_space<vmem>>, vector<32x128xf32>
    tpu.vector_store %arg20[%c0_60, %c0_61], %114 {strides = array<i32>} : memref<32x128xf32, #tpu.memory_space<vmem>>, vector<32x128xf32>,
    %c0_62 = arith.constant 0 : index
    %116 = memref.load %arg18[%c0_62] : memref<1xf32, #tpu.memory_space<smem>>
    %117 = vector.broadcast %116 : f32 to vector<1x128xf32>
    %118 = vector.broadcast %117 : vector<1x128xf32> to vector<32x128xf32>
    %119 = arith.addf %114, %118 : vector<32x128xf32>
    %c0_63 = arith.constant 0 : index
    %c0_64 = arith.constant 0 : index
    %120 = vector.load %arg17[%c0_63, %c0_64] : memref<128x128xf32, #tpu.memory_space<vmem>>, vector<128x128xf32>
    %cst_65 = arith.constant dense<0.000000e+00> : vector<32x128xf32>
    %121 = tpu.matmul %119, %120, %cst_65 {dimension_numbers = #tpu.dot_dimension_numbers<[1], [0], [0], [1], [0, 0, 1, 1], [], []>} : vector<32x128xf32>, vector<128x128xf32>, vector<32x128xf32> -> vector<32x128xf32>
    %122 = vector.broadcast %117 : vector<1x128xf32> to vector<32x128xf32>
    %123 = arith.subf %121, %122 : vector<32x128xf32>
    %c0_66 = arith.constant 0 : index
    %c0_67 = arith.constant 0 : index
    %124 = vector.load %arg19[%c0_66, %c0_67] : memref<32x128xf32, #tpu.memory_space<vmem>>, vector<32x128xf32>
    tpu.vector_store %arg19[%c0_66, %c0_67], %123 {strides = array<i32>} : memref<32x128xf32, #tpu.memory_space<vmem>>, vector<32x128xf32>,
    return
  }
}

</mosaic_0001>

<bundles_post_ra>
// kernel: custom-call.11
= control target key start
LH: loop header
LB: loop body
LE: loop exit
PB: predicated region body
PF: predicated region fallthrough
CT: control target
= control target key end

     0   :  { %5 = vsyncpa [#allocation4], 0  ;;  %s682_s12 = smov [#allocation0]   ;;  %s784_s0 = inlined_call_operand.vmem [shape: f32[5,5], index: 0, kind: input, shape index: {}]   ;;  %s785_s1 = inlined_call_operand.vmem [shape: f32[5,5], index: 1, kind: output, shape index: {0}]   ;;  %s786_s2 = inlined_call_operand.hbm [shape: s32[5], index: 2, kind: output, shape index: {1}]   ;;  %s787_s3 = inlined_call_operand.vmem [shape: s32[5], index: 3, kind: output, shape index: {2}]  }
   0x1   :  { %s686_s15 = smov %s784_s0  }
   0x2 LB: > { %v53_v0 = vld [vmem:[%s688_s15] sm:$0xff]  ;;  %s55_s15 = scalar_lea.vmem %s688_s15, 8   ;;  %s688_s15 = sphi %s686_s15, %s55_s15   ;;  %s684_s12 = sphi %s682_s12, %s56_s12  }
   0x3   : > { %54 = vst [vmem:[%s684_s12] sm:$0xff] %v53_v0  ;;  %s56_s12 = scalar_lea.vmem %s684_s12, 8   ;;  %p50_p0 = scmp.gt.s32.totalorder %s55_s15, %s784_s0 }
   0x4   :  { %v71_v2 = vlaneseq (%p50_p0)  ;;  %v702_v3 = vmov (%p50_p0), 0   ;;  %s734_s18 = smov (%p50_p0), 0  }
   0x5   :  { %52 = sbr.rel (!%p50_p0) target bundleno = 2 (0x2), region = 152  ;;  %70 = vst [vmem:[#allocation2] sm:$0x1] (%p50_p0), %v702_v3 }
   0x6   :  { %v731_v4 = vshrl.u32 (%p50_p0), %v71_v2, 7 }
   0x8   :  { %75 = vst [vmem:[#allocation7] sm:$0xff] (%p50_p0), %v731_v4 }
   0xa   :  { %v68_v1 = vld [vmem:[#allocation0] sm:$0xff] (%p50_p0) }
   0xb   :  { %69 = vst [vmem:[#allocation1] sm:$0xff] (%p50_p0), %v68_v1 }
   0xc LB: > { %vm91_vm0 = vcmp.lt.s32.totalorder %v731_v4, 5  ;;  %v741_v7 = vstv %s692_s18  ;;  %s132_s0 = ssub.s32 128, %s692_s18  ;;  %v138_v37 = vand.u32 127, %v71_v2  ;;  %v141_v39 = vld [vmem:[#allocation2] ss:$0 sm:$0xff]  ;;  %s144_s19 = scalar_lea.vmem [#allocation1], %s692_s18  ;;  %s692_s18 = sphi %s734_s18, %s81_s18  }
   0xd   : > { %vm90_vm1 = vcmp.ge.s32.totalorder %v731_v4, %v741_v7  ;;  %s150_s21 = scalar_lea.vmem [#allocation7], %s692_s18  ;;  %vm170_vm15 = vcmp.gt.s32.totalorder %v731_v4, %v741_v7  ;;  %s81_s18 = sadd.s32 1, %s692_s18  }
   0xe   : > { %vm92_vm3 = vmand %vm90_vm1, %vm91_vm0  ;;  %vm162_vm12 = vcmp.gt.s32.totalorder %v138_v37, %v741_v7  ;;  %vm139_vm13 = vcmp.eq.s32.totalorder %v138_v37, %v741_v7  ;;  %p78_p1 = scmp.ge.s32.totalorder %s81_s18, 5  }
   0xf   : > { %v152_v41 = vld [vmem:[%s150_s21] ss:$0 sm:$0xff]  ;;  %vm174_vm1 = vmand %vm170_vm15, %vm139_vm13  ;;  %s694_s26 = smov (%p78_p1), %s785_s1   ;;  %s698_s27 = smov (%p78_p1), [#allocation1]  }
  0x12   : > { %v86_v5 = vld [vmem:[#allocation1] sm:$0xff]  ;;  %v146_v40 = vld [vmem:[%s144_s19] ss:$0 sm:$0xff] }
  0x13   : > { %v87_v6 = vand.u32 2147483647, %v86_v5 }
  0x15   : > { %vm463_vm2 = vcmp.gt.f32.partialorder %v87_v6, -inf }
  0x16   : > { %vm94_vm4 = vmand %vm92_vm3, %vm463_vm2 }
  0x17   : > { %v95_v8 = vsel %vm94_vm4, %v731_v4, %v741_v7  ;;  %v96_v9 = vsel %vm94_vm4, %v87_v6, -inf }
  0x18   : > { %v97_v10 = vrot.slane %v96_v9, 1  ;;  %v98_v11 = vrot.slane %v95_v8, 1 }
  0x1a   : > { %vm99_vm5 = vcmp.ge.f32.partialorder %v97_v10, %v96_v9  ;;  %v102_v12 = vrot.slane %v97_v10, 1  ;;  %v103_v13 = vrot.slane %v98_v11, 1 }
  0x1b   : > { %v100_v14 = vsel %vm99_vm5, %v97_v10, %v96_v9  ;;  %v101_v15 = vsel %vm99_vm5, %v98_v11, %v95_v8 }
  0x1c   : > { %vm104_vm6 = vcmp.ge.f32.partialorder %v102_v12, %v100_v14  ;;  %v107_v16 = vrot.slane %v102_v12, 1  ;;  %v108_v17 = vrot.slane %v103_v13, 1 }
  0x1d   : > { %v105_v18 = vsel %vm104_vm6, %v102_v12, %v100_v14  ;;  %v106_v19 = vsel %vm104_vm6, %v103_v13, %v101_v15 }
  0x1e   : > { %vm109_vm7 = vcmp.ge.f32.partialorder %v107_v16, %v105_v18  ;;  %v112_v20 = vrot.slane %v107_v16, 1  ;;  %v113_v21 = vrot.slane %v108_v17, 1 }
  0x1f   : > { %v110_v22 = vsel %vm109_vm7, %v107_v16, %v105_v18  ;;  %v111_v23 = vsel %vm109_vm7, %v108_v17, %v106_v19 }
  0x20   : > { %vm114_vm8 = vcmp.ge.f32.partialorder %v112_v20, %v110_v22  ;;  %v117_v24 = vrot.slane %v112_v20, 1  ;;  %v118_v25 = vrot.slane %v113_v21, 1 }
  0x21   : > { %v115_v26 = vsel %vm114_vm8, %v112_v20, %v110_v22  ;;  %v116_v27 = vsel %vm114_vm8, %v113_v21, %v111_v23 }
  0x22   : > { %vm119_vm9 = vcmp.ge.f32.partialorder %v117_v24, %v115_v26  ;;  %v122_v28 = vrot.slane %v117_v24, 1  ;;  %v123_v29 = vrot.slane %v118_v25, 1 }
  0x23   : > { %v120_v30 = vsel %vm119_vm9, %v117_v24, %v115_v26  ;;  %v121_v31 = vsel %vm119_vm9, %v118_v25, %v116_v27 }
  0x24   : > { %vm124_vm10 = vcmp.ge.f32.partialorder %v122_v28, %v120_v30  ;;  %v127_v32 = vrot.slane %v122_v28, 1  ;;  %v128_v33 = vrot.slane %v123_v29, 1 }
  0x25   : > { %v125_v34 = vsel %vm124_vm10, %v122_v28, %v120_v30  ;;  %v126_v35 = vsel %vm124_vm10, %v123_v29, %v121_v31 }
  0x26   : > { %vm129_vm11 = vcmp.ge.f32.partialorder %v127_v32, %v125_v34 }
  0x27   : > { %v131_v36 = vsel %vm129_vm11, %v128_v33, %v126_v35 }
  0x28   : > { %133 = vrot.lane.b32.xlu0 %v131_v36, %s132_s0 }
  0x9a   : > { %v134_v38 = vpop.permute.xlu0 %133 }
  0x9b   : > { %471 = vpush %v134_v38 }
  0xcc   : > { %s472_s20 = spop %471 }
  0xcd   : > { %v140_v42 = vstv %s472_s20  ;;  %s145_s22 = scalar_lea.vmem [#allocation1], %s472_s20  ;;  %s151_s23 = scalar_lea.vmem [#allocation7], %s472_s20 }
  0xce   : > { %v147_v43 = vld [vmem:[%s145_s22] ss:$0 sm:$0xff]  ;;  %v142_v45 = vsel %vm139_vm13, %v140_v42, %v141_v39 }
  0xcf   : > { %v153_v44 = vld [vmem:[%s151_s23] ss:$0 sm:$0xff]  ;;  %148 = vst [vmem:[%s145_s22] sm:$0x1] %v146_v40  ;;  %vm156_vm14 = vcmp.ne.f32.partialorder %v147_v43, 0.0  ;;  %143 = vst [vmem:[#allocation2] sm:$0x1] %v142_v45 }
  0xd0   : > { %154 = vst [vmem:[%s151_s23] sm:$0x1] %v152_v41  ;;  %149 = vst [vmem:[%s144_s19] sm:$0x1] %v147_v43  ;;  %v163_v52 = vsel %vm162_vm12, %v147_v43, 0.0 }
  0xd1   : > { %155 = vst [vmem:[%s150_s21] sm:$0x1] %v153_v44  ;;  %vm157_vm0 = vmand %vm139_vm13, %vm156_vm14 }
  0xd2   : > { %v158_v46 = vsel %vm157_vm0, %v147_v43, 1.0 }
  0xd3   : > { %v171_v47 = vsel %vm170_vm15, %v158_v46, 1.0 }
  0xd4   : > { %596 = vrcp.f32 %v171_v47 }
  0xd6   :  { %v233_v57 = vld [vmem:[#allocation2] sm:$0x1] (%p78_p1) }
  0xd7   : > { %v167_v49 = vld [vmem:[#allocation1] sm:$0xff]  ;;  %235 = vst [vmem:[#allocation3] sm:$0x1] (%p78_p1), %v233_v57 }
  0xd8   :  { %v181_v56 = vld [vmem:[#allocation7] sm:$0xff] (%p78_p1) }
  0xde   : > { %v597_v48 = vpop.eup %596 }
  0xdf   : > { %v173_v50 = vmul.f32 %v597_v48, %v167_v49 }
  0xe1   : > { %v175_v51 = vsel %vm174_vm1, %v173_v50, 0.0 }
  0xe2   : > { %176 = vadd.xlane.f32.xlu0 %v175_v51 }
 0x10f   :  { %197 = vxpose.xlu0.b32.start.end [1/1] (short) (narrow) (%p78_p1), %v181_v56, 8 }
 0x16e   :  { %80 = sbr.rel (!%p78_p1) target bundleno = 12 (0xc), region = 163 }
 0x16f   : > { %v177_v53 = vpop.xlane.xlu0 %176 }
 0x170   : > { %v178_v54 = vmul.f32 %v177_v53, %v163_v52 }
 0x172   : > { %v179_v55 = vsub.f32 %v173_v50, %v178_v54 }
 0x174   : > { %180 = vst [vmem:[#allocation1] sm:$0xff] %v179_v55 }
 0x18f   :  { %v213_v58 = vpop.trf.xlu0 }
 0x190   :  { %229 = vst [vmem:[#allocation5] sm:$0x1] %v213_v58 }
 0x197   :  { %v239_v59 = vld [vmem:[#allocation5] sm:$0x1] }
 0x198   :  { %241 = vst [vmem:[#allocation6] sm:$0x1] %v239_v59 }
 0x199 LB: > { %v289_v60 = vld [vmem:[%s700_s27] sm:$0xff]  ;;  %s291_s27 = scalar_lea.vmem %s700_s27, 8   ;;  %s700_s27 = sphi %s698_s27, %s291_s27   ;;  %s696_s26 = sphi %s694_s26, %s292_s26  }
 0x19a   : > { %290 = vst [vmem:[%s696_s26] sm:$0xff] %v289_v60  ;;  %s292_s26 = scalar_lea.vmem %s696_s26, 8   ;;  %p286_p2 = scmp.gt.s32.totalorder %s291_s27, [#allocation1] }
 0x19b   :  { %s703_s28 = smov (%p286_p2), [#allocation3]  }
 0x19c   :  { %288 = sbr.rel (!%p286_p2) target bundleno = 409 (0x199), region = 185  ;;  %s309_s29 = sshll.u32 (%p286_p2), %s703_s28, 4  ;;  %s310_s29 = int_to_ptr.vmem [resolvable:$true] %s309_s29 }
 0x19d   :  { %s598_s1 = scalar_lea.vmem (%p286_p2), %s310_s29, 16  ;;  %s602_s5 = scalar_lea.vmem (%p286_p2), %s310_s29, 32 }
 0x19e   :  { %p599_p3 = scmp.ne.s32.totalorder (%p286_p2), %s310_s29, %s598_s1  ;;  %p603_p4 = scmp.lt.s32.totalorder (%p286_p2), %s310_s29, %s310_s29 }
 0x19f   :  { %v375_v61 = vld [vmem:[#allocation6] sm:$0x1] (%p286_p2)  ;;  %p604_p5 = scmp.lt.s32.totalorder (%p286_p2), %s602_s5, %s598_s1 }
 0x1a0   :  { %376 = vst [vmem:[%s787_s3] sm:$0x1] (%p286_p2), %v375_v61 }
 0x1a1   :  { %p605_p6 = por (%p286_p2), %p604_p5, %p603_p4 }
 0x1a3   :  { %p606_p7 = pnand %p605_p6, %p599_p3 }
 0x1a5   :  { %609 = shalt.err (!%p606_p7)
}
 0x1a6   :  { %s610_s8 = scalar_lea.hbm %s786_s2, 16 }
 0x1a7   :  { %p611_p8 = scmp.ne.s32.totalorder %s786_s2, %s610_s8  ;;  %p614_p9 = scmp.lt.u32.totalorder %s610_s8, %s786_s2 }
 0x1a9   :  { %p616_p10 = pnand %p614_p9, %p611_p8 }
 0x1ab   :  { %619 = shalt.err (!%p616_p10)
}
 0x1ac   :  { %312 = dma.vmem_to_hbm [thread:$0]  %s310_s29, 16, %s786_s2, [#allocation4]  }
 0x1ad   :  { %680 = dma.done.wait [#allocation4], 16  }
 0x1ae   :  { %681 = vsyncadd [#allocation4], 4294967280 }
 0x1af   :  { %382 = vsyncpa [#allocation4], 1 }

// kernel: custom-call.13
= control target key start
LH: loop header
LB: loop body
LE: loop exit
PB: predicated region body
PF: predicated region fallthrough
CT: control target
= control target key end

     0   :  { %v34_v0 = vlaneseq  ;;  %v150_v9 = vmov -1.0   ;;  %s167_s0 = inlined_call_operand.vmem [shape: f32[1,5,5], index: 0, kind: input, shape index: {}]   ;;  %s168_s1 = inlined_call_operand.vmem [shape: f32[1,5,5], index: 1, kind: output, shape index: {}]  }
   0x1   :  { %v29_v1 = vld [vmem:[%s167_s0] sm:$0xff] }
   0x2   :  { %v35_v2 = vand.u32 127, %v34_v0  ;;  %v38_v3 = vshrl.u32 %v34_v0, 7 }
   0x4   :  { %vm36_vm0 = vcmp.lt.s32.totalorder %v35_v2, 5  ;;  %vm40_vm1 = vcmp.eq.s32.totalorder %v38_v3, %v35_v2  ;;  %vm45_vm2 = vcmp.ge.s32.totalorder %v38_v3, %v35_v2  ;;  %vm59_vm4 = vcmp.eq.s32.totalorder %v35_v2, 0 }
   0x5   :  { %v42_v4 = vsel %vm40_vm1, %v29_v1, 0.0  ;;  %vm46_vm3 = vmand %vm45_vm2, %vm36_vm0  ;;  %vm56_vm5 = vcmp.eq.s32.totalorder %v35_v2, %v38_v3  ;;  %v60_v10 = vsel %vm59_vm4, 1.0, %v150_v9  ;;  %vm67_vm6 = vcmp.eq.s32.totalorder %v35_v2, 1 }
   0x6   :  { %v47_v5 = vsel %vm46_vm3, %v29_v1, 0.0  ;;  %43 = vadd.xlane.f32.xlu0 %v42_v4  ;;  %v61_v11 = vsel %vm56_vm5, %v60_v10, 0.0  ;;  %vm77_vm7 = vcmp.eq.s32.totalorder %v35_v2, 2  ;;  %vm87_vm8 = vcmp.eq.s32.totalorder %v35_v2, 3 }
   0x7   :  { %vm97_vm9 = vcmp.eq.s32.totalorder %v35_v2, 4 }
  0x93   :  { %v44_v6 = vpop.xlane.xlu0 %43 }
  0x94   :  { %148 = vrcp.f32 %v44_v6  ;;  %vm104_vm10 = vweird.f32 %v44_v6 }
  0x9e   :  { %v149_v7 = vpop.eup %148 }
  0x9f   :  { %v49_v8 = vmul.f32 %v149_v7, %v47_v5 }
  0xa1   :  { %50 = vst [vmem:[#allocation2] sm:$0xff] %v49_v8 }
  0xa8   :  { %v63_v12 = vld [vmem:[#allocation2 + $0x1] ss:$0 sm:$0xff]  ;;  %v73_v15 = vld [vmem:[#allocation2 + $0x2] ss:$0 sm:$0xff]  ;;  %v83_v20 = vld [vmem:[#allocation2 + $0x3] ss:$0 sm:$0xff] }
  0xa9   :  { %v64_v13 = vxor.u32 2147483648, %v63_v12  ;;  %v74_v17 = vxor.u32 2147483648, %v73_v15  ;;  %v84_v22 = vxor.u32 2147483648, %v83_v20  ;;  %v93_v25 = vld [vmem:[#allocation2 + $0x4] ss:$0 sm:$0xff] }
  0xaa   :  { %v94_v27 = vxor.u32 2147483648, %v93_v25 }
  0xab   :  { %v68_v14 = vmul.f32 %v64_v13, %v61_v11 }
  0xad   :  { %69 = vadd.xlane.f32.xlu0 %v68_v14 }
 0x13a   :  { %v70_v16 = vpop.xlane.xlu0 %69 }
 0x13b   :  { %v71_v18 = vsel %vm67_vm6, %v70_v16, %v61_v11 }
 0x13c   :  { %v78_v19 = vmul.f32 %v74_v17, %v71_v18 }
 0x13e   :  { %79 = vadd.xlane.f32.xlu1 %v78_v19 }
 0x1cb   :  { %v80_v21 = vpop.xlane.xlu1 %79 }
 0x1cc   :  { %v81_v23 = vsel %vm77_vm7, %v80_v21, %v71_v18 }
 0x1cd   :  { %v88_v24 = vmul.f32 %v84_v22, %v81_v23 }
 0x1cf   :  { %89 = vadd.xlane.f32.xlu1 %v88_v24 }
 0x25c   :  { %v90_v26 = vpop.xlane.xlu1 %89 }
 0x25d   :  { %v91_v28 = vsel %vm87_vm8, %v90_v26, %v81_v23 }
 0x25e   :  { %v98_v29 = vmul.f32 %v94_v27, %v91_v28 }
 0x260   :  { %99 = vadd.xlane.f32.xlu0 %v98_v29 }
 0x2ed   :  { %v100_v30 = vpop.xlane.xlu0 %99 }
 0x2ee   :  { %v101_v31 = vsel %vm97_vm9, %v100_v30, %v91_v28 }
 0x2ef   :  { %v103_v32 = vmul.f32 %v149_v7, %v101_v31 }
 0x2f1   :  { %v105_v33 = vsel %vm104_vm10, %v101_v31, %v103_v32 }
 0x2f2   :  { %135 = vst [vmem:[%s168_s1] sm:$0xff] %v105_v33 }

// kernel: custom-call.12
= control target key start
LH: loop header
LB: loop body
LE: loop exit
PB: predicated region body
PF: predicated region fallthrough
CT: control target
= control target key end

     0   :  { %v34_v0 = vlaneseq  ;;  %v149_v9 = vmov -1.0   ;;  %s166_s0 = inlined_call_operand.vmem [shape: f32[1,5,5], index: 0, kind: input, shape index: {}]   ;;  %s167_s1 = inlined_call_operand.vmem [shape: f32[1,5,5], index: 1, kind: output, shape index: {}]  }
   0x1   :  { %v29_v1 = vld [vmem:[%s166_s0] sm:$0xff] }
   0x2   :  { %v35_v2 = vand.u32 127, %v34_v0  ;;  %v38_v3 = vshrl.u32 %v34_v0, 7 }
   0x4   :  { %vm36_vm0 = vcmp.lt.s32.totalorder %v35_v2, 5  ;;  %vm40_vm1 = vcmp.eq.s32.totalorder %v38_v3, %v35_v2  ;;  %vm45_vm2 = vcmp.le.s32.totalorder %v38_v3, %v35_v2  ;;  %vm59_vm4 = vcmp.eq.s32.totalorder %v35_v2, 4 }
   0x5   :  { %v42_v4 = vsel %vm40_vm1, %v29_v1, 0.0  ;;  %vm46_vm3 = vmand %vm45_vm2, %vm36_vm0  ;;  %vm56_vm5 = vcmp.eq.s32.totalorder %v35_v2, %v38_v3  ;;  %v60_v10 = vsel %vm59_vm4, 1.0, %v149_v9  ;;  %vm67_vm6 = vcmp.eq.s32.totalorder %v35_v2, 3 }
   0x6   :  { %v47_v5 = vsel %vm46_vm3, %v29_v1, 0.0  ;;  %43 = vadd.xlane.f32.xlu0 %v42_v4  ;;  %v61_v11 = vsel %vm56_vm5, %v60_v10, 0.0  ;;  %vm77_vm7 = vcmp.eq.s32.totalorder %v35_v2, 2  ;;  %vm87_vm8 = vcmp.eq.s32.totalorder %v35_v2, 1 }
   0x7   :  { %vm96_vm9 = vcmp.eq.s32.totalorder %v35_v2, 0 }
  0x93   :  { %v44_v6 = vpop.xlane.xlu0 %43 }
  0x94   :  { %147 = vrcp.f32 %v44_v6  ;;  %vm103_vm10 = vweird.f32 %v44_v6 }
  0x9e   :  { %v148_v7 = vpop.eup %147 }
  0x9f   :  { %v49_v8 = vmul.f32 %v148_v7, %v47_v5 }
  0xa1   :  { %50 = vst [vmem:[#allocation2] sm:$0xff] %v49_v8 }
  0xa8   :  { %v63_v12 = vld [vmem:[#allocation2 + $0x3] ss:$0 sm:$0xff]  ;;  %v73_v15 = vld [vmem:[#allocation2 + $0x2] ss:$0 sm:$0xff]  ;;  %v83_v20 = vld [vmem:[#allocation2 + $0x1] ss:$0 sm:$0xff] }
  0xa9   :  { %v64_v13 = vxor.u32 2147483648, %v63_v12  ;;  %v74_v17 = vxor.u32 2147483648, %v73_v15  ;;  %v84_v22 = vxor.u32 2147483648, %v83_v20  ;;  %v92_v25 = vld [vmem:[#allocation2] ss:$0 sm:$0xff] }
  0xaa   :  { %v93_v27 = vxor.u32 2147483648, %v92_v25 }
  0xab   :  { %v68_v14 = vmul.f32 %v64_v13, %v61_v11 }
  0xad   :  { %69 = vadd.xlane.f32.xlu0 %v68_v14 }
 0x13a   :  { %v70_v16 = vpop.xlane.xlu0 %69 }
 0x13b   :  { %v71_v18 = vsel %vm67_vm6, %v70_v16, %v61_v11 }
 0x13c   :  { %v78_v19 = vmul.f32 %v74_v17, %v71_v18 }
 0x13e   :  { %79 = vadd.xlane.f32.xlu1 %v78_v19 }
 0x1cb   :  { %v80_v21 = vpop.xlane.xlu1 %79 }
 0x1cc   :  { %v81_v23 = vsel %vm77_vm7, %v80_v21, %v71_v18 }
 0x1cd   :  { %v88_v24 = vmul.f32 %v84_v22, %v81_v23 }
 0x1cf   :  { %89 = vadd.xlane.f32.xlu1 %v88_v24 }
 0x25c   :  { %v90_v26 = vpop.xlane.xlu1 %89 }
 0x25d   :  { %v91_v28 = vsel %vm87_vm8, %v90_v26, %v81_v23 }
 0x25e   :  { %v97_v29 = vmul.f32 %v93_v27, %v91_v28 }
 0x260   :  { %98 = vadd.xlane.f32.xlu0 %v97_v29 }
 0x2ed   :  { %v99_v30 = vpop.xlane.xlu0 %98 }
 0x2ee   :  { %v100_v31 = vsel %vm96_vm9, %v99_v30, %v91_v28 }
 0x2ef   :  { %v102_v32 = vmul.f32 %v148_v7, %v100_v31 }
 0x2f1   :  { %v104_v33 = vsel %vm103_vm10, %v100_v31, %v102_v32 }
 0x2f2   :  { %134 = vst [vmem:[%s167_s1] sm:$0xff] %v104_v33 }

// kernel: lgn_forward.1
= control target key start
LH: loop header
LB: loop body
LE: loop exit
PB: predicated region body
PF: predicated region fallthrough
CT: control target
= control target key end

     0   :  { %s1959_s1 = inlined_call_operand.vmem [shape: f32[128,128], index: 1, kind: input, shape index: {}]   ;;  %s1960_s0 = inlined_call_operand.vmem [shape: f32[32,128], index: 0, kind: input, shape index: {}]   ;;  %s1961_s3 = inlined_call_operand.vmem [shape: f32[128,128], index: 3, kind: input, shape index: {}]   ;;  %s1962_s2 = inlined_call_operand.vmem [shape: f32[1,128], index: 2, kind: input, shape index: {}]   ;;  %s1963_s7 = inlined_call_operand.vmem [shape: f32[128,128], index: 7, kind: input, shape index: {}]   ;;  %s1964_s4 = inlined_call_operand.vmem [shape: f32[1,128], index: 4, kind: input, shape index: {}]   ;;  %s1965_s5 = inlined_call_operand.vmem [shape: f32[1,128], index: 5, kind: input, shape index: {}]   ;;  %s1966_s6 = inlined_call_operand.vmem [shape: f32[1,128], index: 6, kind: input, shape index: {}]   ;;  %s1967_s11 = inlined_call_operand.vmem [shape: f32[128,128], index: 11, kind: input, shape index: {}]   ;;  %s1968_s8 = inlined_call_operand.vmem [shape: f32[1,128], index: 8, kind: input, shape index: {}]   ;;  %s1969_s9 = inlined_call_operand.vmem [shape: f32[1,128], index: 9, kind: input, shape index: {}]   ;;  %s1970_s10 = inlined_call_operand.vmem [shape: f32[1,128], index: 10, kind: input, shape index: {}]   ;;  %s1971_s15 = inlined_call_operand.vmem [shape: f32[128,128], index: 15, kind: input, shape index: {}]   ;;  %s1972_s17 = inlined_call_operand.vmem [shape: f32[128,128], index: 17, kind: input, shape index: {}]   ;;  %s1973_s12 = inlined_call_operand.vmem [shape: f32[1,128], index: 12, kind: input, shape index: {}]   ;;  %s1974_s13 = inlined_call_operand.vmem [shape: f32[1,128], index: 13, kind: input, shape index: {}]   ;;  %s1975_s14 = inlined_call_operand.vmem [shape: f32[1,128], index: 14, kind: input, shape index: {}]   ;;  %s1976_s16 = inlined_call_operand.vmem [shape: f32[1,128], index: 16, kind: input, shape index: {}]   ;;  %s1977_s18 = inlined_call_operand.<no memory space> [shape: f32[1], index: 18, kind: input, shape index: {}]   ;;  %s1978_s20 = inlined_call_operand.vmem [shape: f32[32,128], index: 20, kind: output, shape index: {1}]   ;;  %s1979_s19 = inlined_call_operand.vmem [shape: f32[32,128], index: 19, kind: output, shape index: {0}]  }
   0x1   :  { %1984 = sst [smem:[#allocation3_spill]] %s1959_s1 }
   0x2   :  { %1985 = sst [smem:[#allocation4_spill]] %s1960_s0  ;;  %s1989_s23 = sld [smem:[#allocation3_spill]] }
   0x3   :  { %1986 = sst [smem:[#allocation5_spill]] %s1961_s3  ;;  %s1990_s0 = sld [smem:[#allocation4_spill]] }
   0x4   :  { %1987 = sst [smem:[#allocation6_spill]] %s1962_s2  ;;  %s1991_s27 = sld [smem:[#allocation5_spill]] }
   0x5   :  { %1988 = sst [smem:[#allocation7_spill]] %s1963_s7  ;;  %s1992_s21 = sld [smem:[#allocation6_spill]] }
   0x8   :  { %v69_v0 = vld [vmem:[%s1989_s23] sm:$0xff]  ;;  %v70_v1 = vld [vmem:[%s1989_s23 + $0x8] sm:$0xff]  ;;  %v71_v2 = vld [vmem:[%s1989_s23 + $0x10] sm:$0xff] }
   0x9   :  { %v1296_v3 = vpack.c.bf16 %v70_v1, %v69_v0  ;;  %v72_v4 = vld [vmem:[%s1989_s23 + $0x18] sm:$0xff]  ;;  %v73_v6 = vld [vmem:[%s1989_s23 + $0x20] sm:$0xff]  ;;  %v74_v7 = vld [vmem:[%s1989_s23 + $0x28] sm:$0xff] }
   0xa   :  { %v1300_v5 = vpack.c.bf16 %v72_v4, %v71_v2  ;;  %v1304_v8 = vpack.c.bf16 %v74_v7, %v73_v6  ;;  %v65_v9 = vld [vmem:[%s1990_s0] sm:$0xff]  ;;  %v75_v10 = vld [vmem:[%s1989_s23 + $0x30] sm:$0xff]  ;;  %v76_v11 = vld [vmem:[%s1989_s23 + $0x38] sm:$0xff] }
   0xb   :  { %1297 = vmatprep.subr.bf16.mxu0 %v1296_v3  ;;  %1100 = vmatprep.mubr.f32.mxu0 %v65_v9  ;;  %v181_v12 = vld [vmem:[%s1991_s27] sm:$0xff]  ;;  %v182_v13 = vld [vmem:[%s1991_s27 + $0x8] sm:$0xff]  ;;  %v183_v14 = vld [vmem:[%s1991_s27 + $0x10] sm:$0xff]  ;;  %v1308_v18 = vpack.c.bf16 %v76_v11, %v75_v10 }
   0xc   :  { %1299 = vmatpush3.bf16.msra.mxu0 %v1296_v3  ;;  %v184_v15 = vld [vmem:[%s1991_s27 + $0x18] sm:$0xff]  ;;  %v1328_v16 = vpack.c.bf16 %v182_v13, %v181_v12  ;;  %v185_v19 = vld [vmem:[%s1991_s27 + $0x20] sm:$0xff]  ;;  %v186_v20 = vld [vmem:[%s1991_s27 + $0x28] sm:$0xff] }
   0xd   :  { %1301 = vmatprep.subr.bf16.mxu0 %v1300_v5  ;;  %v1332_v17 = vpack.c.bf16 %v184_v15, %v183_v14  ;;  %v77_v21 = vld [vmem:[%s1989_s23 + $0x40] sm:$0xff]  ;;  %v78_v22 = vld [vmem:[%s1989_s23 + $0x48] sm:$0xff]  ;;  %v1336_v23 = vpack.c.bf16 %v186_v20, %v185_v19  ;;  %v187_v25 = vld [vmem:[%s1991_s27 + $0x30] sm:$0xff] }
   0xe   :  { %1329 = vmatprep.subr.bf16.mxu1 %v1328_v16  ;;  %v1312_v24 = vpack.c.bf16 %v78_v22, %v77_v21  ;;  %v188_v26 = vld [vmem:[%s1991_s27 + $0x38] sm:$0xff]  ;;  %v79_v27 = vld [vmem:[%s1989_s23 + $0x50] sm:$0xff]  ;;  %v189_v31 = vld [vmem:[%s1991_s27 + $0x40] sm:$0xff] }
   0xf   :  { %1331 = vmatpush3.bf16.msra.mxu1 %v1328_v16  ;;  %v80_v28 = vld [vmem:[%s1989_s23 + $0x58] sm:$0xff]  ;;  %v1340_v29 = vpack.c.bf16 %v188_v26, %v187_v25  ;;  %v190_v32 = vld [vmem:[%s1991_s27 + $0x48] sm:$0xff]  ;;  %v81_v33 = vld [vmem:[%s1989_s23 + $0x60] sm:$0xff] }
  0x10   :  { %1303 = vmatpush3.bf16.msra.mxu0 %v1300_v5  ;;  %1333 = vmatprep.subr.bf16.mxu1 %v1332_v17  ;;  %v1316_v30 = vpack.c.bf16 %v80_v28, %v79_v27  ;;  %v82_v34 = vld [vmem:[%s1989_s23 + $0x68] sm:$0xff]  ;;  %v1344_v35 = vpack.c.bf16 %v190_v32, %v189_v31  ;;  %v191_v37 = vld [vmem:[%s1991_s27 + $0x50] sm:$0xff]  ;;  %v192_v38 = vld [vmem:[%s1991_s27 + $0x58] sm:$0xff] }
  0x11   :  { %1305 = vmatprep.subr.bf16.mxu0 %v1304_v8  ;;  %v1320_v36 = vpack.c.bf16 %v82_v34, %v81_v33  ;;  %v83_v39 = vld [vmem:[%s1989_s23 + $0x70] sm:$0xff]  ;;  %v84_v40 = vld [vmem:[%s1989_s23 + $0x78] sm:$0xff]  ;;  %v1348_v41 = vpack.c.bf16 %v192_v38, %v191_v37  ;;  %v193_v43 = vld [vmem:[%s1991_s27 + $0x60] sm:$0xff]  ;;  %s1993_s23 = sld [smem:[#allocation7_spill]] }
  0x12   :  { %v1324_v42 = vpack.c.bf16 %v84_v40, %v83_v39  ;;  %v194_v44 = vld [vmem:[%s1991_s27 + $0x68] sm:$0xff]  ;;  %v67_v47 = vld [vmem:[%s1990_s0 + $0x10] sm:$0xff]  ;;  %v68_v48 = vld [vmem:[%s1990_s0 + $0x18] sm:$0xff] }
  0x13   :  { %1335 = vmatpush3.bf16.msra.mxu1 %v1332_v17  ;;  %v1352_v45 = vpack.c.bf16 %v194_v44, %v193_v43  ;;  %v66_v46 = vld [vmem:[%s1990_s0 + $0x8] sm:$0xff]  ;;  %v195_v49 = vld [vmem:[%s1991_s27 + $0x70] sm:$0xff]  ;;  %v196_v50 = vld [vmem:[%s1991_s27 + $0x78] sm:$0xff] }
  0x14   :  { %1307 = vmatpush3.bf16.msra.mxu0 %v1304_v8  ;;  %1337 = vmatprep.subr.bf16.mxu1 %v1336_v23  ;;  %v1356_v51 = vpack.c.bf16 %v196_v50, %v195_v49  ;;  %v937_v52 = vld [vmem:[%s1992_s21] ss:$0 sm:$0xff] }
  0x15   :  { %1309 = vmatprep.subr.bf16.mxu0 %v1308_v18  ;;  %v938_v25 = vld [vmem:[%s1964_s4] ss:$0 sm:$0xff] }
  0x17   :  { %1339 = vmatpush3.bf16.msra.mxu1 %v1336_v23  ;;  %v352_v1 = vld [vmem:[%s1993_s23] sm:$0xff]  ;;  %v353_v2 = vld [vmem:[%s1993_s23 + $0x8] sm:$0xff]  ;;  %v354_v4 = vld [vmem:[%s1993_s23 + $0x10] sm:$0xff] }
  0x18   :  { %1311 = vmatpush3.bf16.msra.mxu0 %v1308_v18  ;;  %1341 = vmatprep.subr.bf16.mxu1 %v1340_v29  ;;  %v1360_v3 = vpack.c.bf16 %v353_v2, %v352_v1  ;;  %v355_v5 = vld [vmem:[%s1993_s23 + $0x18] sm:$0xff]  ;;  %v356_v7 = vld [vmem:[%s1993_s23 + $0x20] sm:$0xff]  ;;  %v357_v8 = vld [vmem:[%s1993_s23 + $0x28] sm:$0xff] }
  0x19   :  { %1313 = vmatprep.subr.bf16.mxu0 %v1312_v24  ;;  %v1364_v6 = vpack.c.bf16 %v355_v5, %v354_v4  ;;  %v1368_v9 = vpack.c.bf16 %v357_v8, %v356_v7  ;;  %v358_v10 = vld [vmem:[%s1993_s23 + $0x30] sm:$0xff]  ;;  %v359_v11 = vld [vmem:[%s1993_s23 + $0x38] sm:$0xff]  ;;  %v360_v13 = vld [vmem:[%s1993_s23 + $0x40] sm:$0xff] }
  0x1a   :  { %v1372_v12 = vpack.c.bf16 %v359_v11, %v358_v10  ;;  %v361_v14 = vld [vmem:[%s1993_s23 + $0x48] sm:$0xff]  ;;  %v362_v16 = vld [vmem:[%s1993_s23 + $0x50] sm:$0xff]  ;;  %v363_v17 = vld [vmem:[%s1993_s23 + $0x58] sm:$0xff] }
  0x1b   :  { %1343 = vmatpush3.bf16.msra.mxu1 %v1340_v29  ;;  %v1376_v15 = vpack.c.bf16 %v361_v14, %v360_v13  ;;  %v1380_v18 = vpack.c.bf16 %v363_v17, %v362_v16  ;;  %v364_v19 = vld [vmem:[%s1993_s23 + $0x60] sm:$0xff]  ;;  %v365_v20 = vld [vmem:[%s1993_s23 + $0x68] sm:$0xff]  ;;  %v366_v22 = vld [vmem:[%s1993_s23 + $0x70] sm:$0xff] }
  0x1c   :  { %1315 = vmatpush3.bf16.msra.mxu0 %v1312_v24  ;;  %1345 = vmatprep.subr.bf16.mxu1 %v1344_v35  ;;  %v1384_v21 = vpack.c.bf16 %v365_v20, %v364_v19  ;;  %v367_v23 = vld [vmem:[%s1993_s23 + $0x78] sm:$0xff]  ;;  %v940_v8 = vld [vmem:[%s1966_s6] ss:$0 sm:$0xff] }
  0x1d   :  { %1317 = vmatprep.subr.bf16.mxu0 %v1316_v30  ;;  %v1388_v24 = vpack.c.bf16 %v367_v23, %v366_v22  ;;  %v524_v22 = vld [vmem:[%s1967_s11 + $0x8] sm:$0xff] }
  0x1f   :  { %1347 = vmatpush3.bf16.msra.mxu1 %v1344_v35 }
  0x20   :  { %1319 = vmatpush3.bf16.msra.mxu0 %v1316_v30  ;;  %1349 = vmatprep.subr.bf16.mxu1 %v1348_v41 }
  0x21   :  { %1321 = vmatprep.subr.bf16.mxu0 %v1320_v36 }
  0x23   :  { %1351 = vmatpush3.bf16.msra.mxu1 %v1348_v41 }
  0x24   :  { %1323 = vmatpush3.bf16.msra.mxu0 %v1320_v36  ;;  %1353 = vmatprep.subr.bf16.mxu1 %v1352_v45 }
  0x25   :  { %1325 = vmatprep.subr.bf16.mxu0 %v1324_v42 }
  0x27   :  { %1355 = vmatpush3.bf16.msra.mxu1 %v1352_v45 }
  0x28   :  { %1327 = vmatpush3.bf16.msra.mxu0 %v1324_v42  ;;  %1357 = vmatprep.subr.bf16.mxu1 %v1356_v51 }
  0x29   :  { %1361 = vmatprep.subr.bf16.mxu0 %v1360_v3 }
  0x2b   :  { %1101 = vmatmul.mubr.f32.vlgmr.msra.gmra.mrb[0].mxu0 %v66_v46  ;;  %1359 = vmatpush3.bf16.msra.mxu1 %v1356_v51 }
  0x2c   :  { %1103 = vmatprep.mubr.f32.mxu0 %v67_v47  ;;  %1363 = vmatpush3.bf16.msra.mxu0 %v1360_v3  ;;  %v939_v3 = vld [vmem:[%s1965_s5] ss:$0 sm:$0xff] }
  0x2d   :  { %1365 = vmatprep.subr.bf16.mxu0 %v1364_v6 }
  0x2f   :  { %1104 = vmatmul.mubr.f32.gmra.mrb[2].mxu0 %v68_v48 }
  0x30   :  { %1367 = vmatpush3.bf16.msra.mxu0 %v1364_v6 }
  0x31   :  { %1369 = vmatprep.subr.bf16.mxu0 %v1368_v9 }
  0x34   :  { %1371 = vmatpush3.bf16.msra.mxu0 %v1368_v9 }
  0x35   :  { %1373 = vmatprep.subr.bf16.mxu0 %v1372_v12 }
  0x38   :  { %1375 = vmatpush3.bf16.msra.mxu0 %v1372_v12 }
  0x39   :  { %1377 = vmatprep.subr.bf16.mxu0 %v1376_v15 }
  0x3c   :  { %1379 = vmatpush3.bf16.msra.mxu0 %v1376_v15 }
  0x3d   :  { %1381 = vmatprep.subr.bf16.mxu0 %v1380_v18 }
  0x40   :  { %1383 = vmatpush3.bf16.msra.mxu0 %v1380_v18 }
  0x41   :  { %1385 = vmatprep.subr.bf16.mxu0 %v1384_v21 }
  0x44   :  { %1387 = vmatpush3.bf16.msra.mxu0 %v1384_v21  ;;  %v523_v21 = vld [vmem:[%s1967_s11] sm:$0xff] }
  0x45   :  { %1389 = vmatprep.subr.bf16.mxu0 %v1388_v24  ;;  %v1392_v23 = vpack.c.bf16 %v524_v22, %v523_v21 }
  0x47   :  { %1393 = vmatprep.subr.bf16.mxu1 %v1392_v23 }
  0x48   :  { %1391 = vmatpush3.bf16.msra.mxu0 %v1388_v24  ;;  %v525_v24 = vld [vmem:[%s1967_s11 + $0x10] sm:$0xff] }
  0xfe   :  { %v1102_v53 = vpop.f32.mrb[0].mxu0 }
  0xff   :  { %v164_v54 = vadd.f32 %v1102_v53, %v937_v52  ;;  %v158_v55 = vpop.f32.mrb[1].mxu0 }
 0x100   :  { %v159_v56 = vadd.f32 %v937_v52, %v158_v55 }
 0x101   :  { %v178_v59 = vmax.f32 %v164_v54, 0.0 }
 0x102   :  { %v1105_v57 = vpop.f32.mrb[2].mxu0  ;;  %v177_v58 = vmax.f32 %v159_v56, 0.0 }
 0x103   :  { %v174_v60 = vadd.f32 %v1105_v57, %v937_v52  ;;  %v168_v61 = vpop.f32.mrb[3].mxu0 }
 0x104   :  { %v169_v62 = vadd.f32 %v937_v52, %v168_v61  ;;  %1138 = vmatprep.mubr.f32.mxu1 %v177_v58 }
 0x105   :  { %1139 = vmatmul.mubr.f32.vlgmr.msra.gmra.mrb[0].mxu1 %v178_v59  ;;  %v180_v0 = vmax.f32 %v174_v60, 0.0 }
 0x106   :  { %v179_v63 = vmax.f32 %v169_v62, 0.0  ;;  %1395 = vmatpush3.bf16.msra.mxu1 %v1392_v23  ;;  %v942_v23 = vld [vmem:[%s1969_s9] ss:$0 sm:$0xff] }
 0x108   :  { %1141 = vmatprep.mubr.f32.mxu1 %v179_v63 }
 0x109   :  { %1142 = vmatmul.mubr.f32.gmra.mrb[2].mxu1 %v180_v0 }
 0x1d8   :  { %v1140_v26 = vpop.f32.mrb[0].mxu1 }
 0x1d9   :  { %v276_v27 = vadd.f32 %v1140_v26, %v938_v25  ;;  %v270_v28 = vpop.f32.mrb[1].mxu1 }
 0x1da   :  { %v271_v29 = vadd.f32 %v938_v25, %v270_v28  ;;  %v528_v28 = vld [vmem:[%s1967_s11 + $0x28] sm:$0xff] }
 0x1db   :  { %v299_v30 = vmul.f32 %v276_v27, %v276_v27 }
 0x1dc   :  { %v289_v31 = vadd.f32 %v276_v27, %v271_v29  ;;  %v298_v32 = vmul.f32 %v271_v29, %v271_v29  ;;  %v1143_v33 = vpop.f32.mrb[2].mxu1 }
 0x1dd   :  { %v280_v34 = vpop.f32.mrb[3].mxu1  ;;  %v286_v36 = vadd.f32 %v1143_v33, %v938_v25  ;;  %v531_v33 = vld [vmem:[%s1967_s11 + $0x40] sm:$0xff] }
 0x1de   :  { %v302_v35 = vadd.f32 %v299_v30, %v298_v32  ;;  %v281_v37 = vadd.f32 %v938_v25, %v280_v34  ;;  %v526_v25 = vld [vmem:[%s1967_s11 + $0x18] sm:$0xff]  ;;  %v529_v30 = vld [vmem:[%s1967_s11 + $0x30] sm:$0xff]  ;;  %v532_v34 = vld [vmem:[%s1967_s11 + $0x48] sm:$0xff] }
 0x1df   :  { %v301_v40 = vmul.f32 %v286_v36, %v286_v36  ;;  %v1396_v26 = vpack.c.bf16 %v526_v25, %v525_v24 }
 0x1e0   :  { %v290_v38 = vadd.f32 %v289_v31, %v281_v37  ;;  %v300_v39 = vmul.f32 %v281_v37, %v281_v37  ;;  %v530_v31 = vld [vmem:[%s1967_s11 + $0x38] sm:$0xff] }
 0x1e1   :  { %1397 = vmatprep.subr.bf16.mxu1 %v1396_v26  ;;  %v1404_v32 = vpack.c.bf16 %v530_v31, %v529_v30 }
 0x1e2   :  { %v291_v41 = vadd.f32 %v290_v38, %v286_v36  ;;  %v303_v42 = vadd.f32 %v302_v35, %v300_v39  ;;  %1399 = vmatpush3.bf16.msra.mxu1 %v1396_v26  ;;  %v1408_v35 = vpack.c.bf16 %v532_v34, %v531_v33  ;;  %v535_v39 = vld [vmem:[%s1967_s11 + $0x60] sm:$0xff] }
 0x1e4   :  { %v292_v43 = vrot.slane %v291_v41, 4  ;;  %v304_v44 = vadd.f32 %v303_v42, %v301_v40  ;;  %v536_v40 = vld [vmem:[%s1967_s11 + $0x68] sm:$0xff]  ;;  %v537_v42 = vld [vmem:[%s1967_s11 + $0x70] sm:$0xff] }
 0x1e6   :  { %v293_v45 = vadd.f32 %v292_v43, %v291_v41  ;;  %v305_v46 = vrot.slane %v304_v44, 4  ;;  %v1416_v41 = vpack.c.bf16 %v536_v40, %v535_v39  ;;  %v538_v43 = vld [vmem:[%s1967_s11 + $0x78] sm:$0xff] }
 0x1e8   :  { %v294_v47 = vrot.slane %v293_v45, 2  ;;  %v306_v48 = vadd.f32 %v305_v46, %v304_v44  ;;  %v1420_v44 = vpack.c.bf16 %v538_v43, %v537_v42  ;;  %v695_v42 = vld [vmem:[%s1971_s15 + $0x8] sm:$0xff] }
 0x1ea   :  { %v295_v49 = vadd.f32 %v294_v47, %v293_v45  ;;  %v307_v50 = vrot.slane %v306_v48, 2  ;;  %v941_v45 = vld [vmem:[%s1968_s8] ss:$0 sm:$0xff] }
 0x1ec   :  { %v296_v51 = vrot.slane %v295_v49, 1  ;;  %v308_v52 = vadd.f32 %v307_v50, %v306_v48 }
 0x1ee   :  { %v297_v53 = vadd.f32 %v296_v51, %v295_v49  ;;  %v309_v54 = vrot.slane %v308_v52, 1 }
 0x1f0   :  { %v310_v55 = vadd.f32 %v309_v54, %v308_v52  ;;  %v311_v56 = vmul.f32 0.03125, %v297_v53 }
 0x1f2   :  { %v312_v57 = vmul.f32 0.03125, %v310_v55  ;;  %v313_v58 = vmul.f32 %v311_v56, %v311_v56  ;;  %v318_v59 = vsub.f32 %v281_v37, %v311_v56  ;;  %v316_v60 = vsub.f32 %v271_v29, %v311_v56  ;;  %v534_v37 = vld [vmem:[%s1967_s11 + $0x58] sm:$0xff] }
 0x1f3   :  { %v317_v61 = vsub.f32 %v276_v27, %v311_v56  ;;  %v319_v62 = vsub.f32 %v286_v36, %v311_v56  ;;  %v527_v27 = vld [vmem:[%s1967_s11 + $0x20] sm:$0xff]  ;;  %v533_v36 = vld [vmem:[%s1967_s11 + $0x50] sm:$0xff] }
 0x1f4   :  { %v314_v63 = vsub.f32 %v312_v57, %v313_v58  ;;  %v1400_v29 = vpack.c.bf16 %v528_v28, %v527_v27  ;;  %v1412_v38 = vpack.c.bf16 %v534_v37, %v533_v36  ;;  %v943_v28 = vld [vmem:[%s1970_s10] ss:$0 sm:$0xff] }
 0x1f6   :  { %v315_v0 = vmax.f32 %v314_v63, 0.0  ;;  %1401 = vmatprep.subr.bf16.mxu1 %v1400_v29 }
 0x1f7   :  { %1403 = vmatpush3.bf16.msra.mxu1 %v1400_v29 }
 0x1f8   :  { %v320_v1 = vadd.f32 1e-05, %v315_v0  ;;  %1405 = vmatprep.subr.bf16.mxu1 %v1404_v32 }
 0x1fa   :  { %1488 = vrsqrt.f32 %v320_v1 }
 0x1fb   :  { %1407 = vmatpush3.bf16.msra.mxu1 %v1404_v32 }
 0x1fc   :  { %1409 = vmatprep.subr.bf16.mxu1 %v1408_v35 }
 0x1ff   :  { %1411 = vmatpush3.bf16.msra.mxu1 %v1408_v35 }
 0x200   :  { %1413 = vmatprep.subr.bf16.mxu1 %v1412_v38 }
 0x203   :  { %1415 = vmatpush3.bf16.msra.mxu1 %v1412_v38 }
 0x204   :  { %v1489_v2 = vpop.eup %1488  ;;  %1417 = vmatprep.subr.bf16.mxu1 %v1416_v41 }
 0x205   :  { %v324_v4 = vmul.f32 %v1489_v2, %v318_v59  ;;  %v322_v5 = vmul.f32 %v1489_v2, %v316_v60  ;;  %v323_v6 = vmul.f32 %v1489_v2, %v317_v61  ;;  %v325_v7 = vmul.f32 %v1489_v2, %v319_v62 }
 0x207   :  { %v333_v9 = vmul.f32 %v939_v3, %v322_v5  ;;  %v334_v10 = vmul.f32 %v939_v3, %v323_v6  ;;  %v335_v11 = vmul.f32 %v939_v3, %v324_v4  ;;  %v336_v12 = vmul.f32 %v939_v3, %v325_v7  ;;  %1419 = vmatpush3.bf16.msra.mxu1 %v1416_v41  ;;  %v694_v41 = vld [vmem:[%s1971_s15] sm:$0xff] }
 0x208   :  { %1421 = vmatprep.subr.bf16.mxu1 %v1420_v44  ;;  %v1424_v43 = vpack.c.bf16 %v695_v42, %v694_v41 }
 0x209   :  { %v344_v13 = vadd.f32 %v940_v8, %v333_v9  ;;  %v345_v14 = vadd.f32 %v940_v8, %v334_v10  ;;  %v346_v15 = vadd.f32 %v940_v8, %v335_v11  ;;  %v347_v18 = vadd.f32 %v940_v8, %v336_v12 }
 0x20a   :  { %1425 = vmatprep.subr.bf16.mxu0 %v1424_v43 }
 0x20b   :  { %v348_v16 = vmax.f32 %v344_v13, 0.0  ;;  %v349_v17 = vmax.f32 %v345_v14, 0.0  ;;  %v350_v19 = vmax.f32 %v346_v15, 0.0  ;;  %v351_v20 = vmax.f32 %v347_v18, 0.0  ;;  %1423 = vmatpush3.bf16.msra.mxu1 %v1420_v44  ;;  %v696_v44 = vld [vmem:[%s1971_s15 + $0x10] sm:$0xff] }
 0x20d   :  { %1176 = vmatprep.mubr.f32.mxu0 %v348_v16 }
 0x20e   :  { %1177 = vmatmul.mubr.f32.vlgmr.msra.gmra.mrb[4].mxu0 %v349_v17 }
 0x20f   :  { %1179 = vmatprep.mubr.f32.mxu0 %v350_v19  ;;  %1427 = vmatpush3.bf16.msra.mxu0 %v1424_v43 }
 0x212   :  { %1180 = vmatmul.mubr.f32.gmra.mrb[6].mxu0 %v351_v20 }
 0x2e1   :  { %v1178_v46 = vpop.f32.mrb[4].mxu0 }
 0x2e2   :  { %v447_v47 = vadd.f32 %v1178_v46, %v941_v45  ;;  %v441_v48 = vpop.f32.mrb[5].mxu0 }
 0x2e3   :  { %v442_v49 = vadd.f32 %v941_v45, %v441_v48  ;;  %v699_v48 = vld [vmem:[%s1971_s15 + $0x28] sm:$0xff] }
 0x2e4   :  { %v470_v50 = vmul.f32 %v447_v47, %v447_v47 }
 0x2e5   :  { %v460_v51 = vadd.f32 %v447_v47, %v442_v49  ;;  %v469_v52 = vmul.f32 %v442_v49, %v442_v49  ;;  %v1181_v53 = vpop.f32.mrb[6].mxu0 }
 0x2e6   :  { %v451_v54 = vpop.f32.mrb[7].mxu0  ;;  %v457_v56 = vadd.f32 %v1181_v53, %v941_v45  ;;  %v702_v53 = vld [vmem:[%s1971_s15 + $0x40] sm:$0xff] }
 0x2e7   :  { %v473_v55 = vadd.f32 %v470_v50, %v469_v52  ;;  %v452_v57 = vadd.f32 %v941_v45, %v451_v54  ;;  %v697_v45 = vld [vmem:[%s1971_s15 + $0x18] sm:$0xff]  ;;  %v700_v50 = vld [vmem:[%s1971_s15 + $0x30] sm:$0xff]  ;;  %v703_v54 = vld [vmem:[%s1971_s15 + $0x48] sm:$0xff] }
 0x2e8   :  { %v472_v60 = vmul.f32 %v457_v56, %v457_v56  ;;  %v1428_v46 = vpack.c.bf16 %v697_v45, %v696_v44 }
 0x2e9   :  { %v461_v58 = vadd.f32 %v460_v51, %v452_v57  ;;  %v471_v59 = vmul.f32 %v452_v57, %v452_v57  ;;  %v701_v51 = vld [vmem:[%s1971_s15 + $0x38] sm:$0xff] }
 0x2ea   :  { %1429 = vmatprep.subr.bf16.mxu0 %v1428_v46  ;;  %v1436_v52 = vpack.c.bf16 %v701_v51, %v700_v50 }
 0x2eb   :  { %v462_v61 = vadd.f32 %v461_v58, %v457_v56  ;;  %v474_v62 = vadd.f32 %v473_v55, %v471_v59  ;;  %1431 = vmatpush3.bf16.msra.mxu0 %v1428_v46  ;;  %v1440_v55 = vpack.c.bf16 %v703_v54, %v702_v53  ;;  %v706_v59 = vld [vmem:[%s1971_s15 + $0x60] sm:$0xff] }
 0x2ed   :  { %v463_v63 = vrot.slane %v462_v61, 4  ;;  %v475_v0 = vadd.f32 %v474_v62, %v472_v60  ;;  %v707_v60 = vld [vmem:[%s1971_s15 + $0x68] sm:$0xff]  ;;  %v708_v62 = vld [vmem:[%s1971_s15 + $0x70] sm:$0xff] }
 0x2ef   :  { %v464_v1 = vadd.f32 %v463_v63, %v462_v61  ;;  %v476_v2 = vrot.slane %v475_v0, 4  ;;  %v1448_v61 = vpack.c.bf16 %v707_v60, %v706_v59  ;;  %v709_v63 = vld [vmem:[%s1971_s15 + $0x78] sm:$0xff] }
 0x2f1   :  { %v465_v3 = vrot.slane %v464_v1, 2  ;;  %v477_v4 = vadd.f32 %v476_v2, %v475_v0  ;;  %v1452_v0 = vpack.c.bf16 %v709_v63, %v708_v62  ;;  %v821_v2 = vld [vmem:[%s1972_s17 + $0x8] sm:$0xff] }
 0x2f3   :  { %v466_v5 = vadd.f32 %v465_v3, %v464_v1  ;;  %v478_v6 = vrot.slane %v477_v4, 2  ;;  %v820_v1 = vld [vmem:[%s1972_s17] sm:$0xff]  ;;  %v822_v3 = vld [vmem:[%s1972_s17 + $0x10] sm:$0xff] }
 0x2f5   :  { %v467_v7 = vrot.slane %v466_v5, 1  ;;  %v479_v8 = vadd.f32 %v478_v6, %v477_v4  ;;  %v1456_v4 = vpack.c.bf16 %v821_v2, %v820_v1  ;;  %v946_v2 = vld [vmem:[%s1975_s14] ss:$0 sm:$0xff] }
 0x2f7   :  { %v468_v9 = vadd.f32 %v467_v7, %v466_v5  ;;  %v480_v10 = vrot.slane %v479_v8, 1  ;;  %v823_v5 = vld [vmem:[%s1972_s17 + $0x18] sm:$0xff]  ;;  %v824_v7 = vld [vmem:[%s1972_s17 + $0x20] sm:$0xff]  ;;  %1457 = vmatprep.subr.bf16.mxu1 %v1456_v4 }
 0x2f8   :  { %v1460_v6 = vpack.c.bf16 %v823_v5, %v822_v3 }
 0x2f9   :  { %v481_v11 = vadd.f32 %v480_v10, %v479_v8  ;;  %v482_v12 = vmul.f32 0.03125, %v468_v9  ;;  %v825_v8 = vld [vmem:[%s1972_s17 + $0x28] sm:$0xff]  ;;  %v826_v10 = vld [vmem:[%s1972_s17 + $0x30] sm:$0xff] }
 0x2fa   :  { %v1464_v9 = vpack.c.bf16 %v825_v8, %v824_v7 }
 0x2fb   :  { %v483_v13 = vmul.f32 0.03125, %v481_v11  ;;  %v484_v14 = vmul.f32 %v482_v12, %v482_v12  ;;  %v489_v15 = vsub.f32 %v452_v57, %v482_v12  ;;  %v487_v16 = vsub.f32 %v442_v49, %v482_v12  ;;  %v705_v57 = vld [vmem:[%s1971_s15 + $0x58] sm:$0xff] }
 0x2fc   :  { %v488_v17 = vsub.f32 %v447_v47, %v482_v12  ;;  %v490_v18 = vsub.f32 %v457_v56, %v482_v12  ;;  %v698_v47 = vld [vmem:[%s1971_s15 + $0x20] sm:$0xff]  ;;  %v704_v56 = vld [vmem:[%s1971_s15 + $0x50] sm:$0xff]  ;;  %v827_v11 = vld [vmem:[%s1972_s17 + $0x38] sm:$0xff] }
 0x2fd   :  { %v485_v19 = vsub.f32 %v483_v13, %v484_v14  ;;  %v1432_v49 = vpack.c.bf16 %v699_v48, %v698_v47  ;;  %v1444_v58 = vpack.c.bf16 %v705_v57, %v704_v56  ;;  %v1468_v12 = vpack.c.bf16 %v827_v11, %v826_v10  ;;  %v828_v13 = vld [vmem:[%s1972_s17 + $0x40] sm:$0xff]  ;;  %v829_v14 = vld [vmem:[%s1972_s17 + $0x48] sm:$0xff] }
 0x2ff   :  { %v486_v20 = vmax.f32 %v485_v19, 0.0  ;;  %1433 = vmatprep.subr.bf16.mxu0 %v1432_v49  ;;  %v944_v19 = vld [vmem:[%s1973_s12] ss:$0 sm:$0xff] }
 0x300   :  { %1435 = vmatpush3.bf16.msra.mxu0 %v1432_v49 }
 0x301   :  { %v491_v21 = vadd.f32 1e-05, %v486_v20  ;;  %1437 = vmatprep.subr.bf16.mxu0 %v1436_v52 }
 0x303   :  { %1490 = vrsqrt.f32 %v491_v21 }
 0x304   :  { %1439 = vmatpush3.bf16.msra.mxu0 %v1436_v52 }
 0x305   :  { %1441 = vmatprep.subr.bf16.mxu0 %v1440_v55 }
 0x308   :  { %1443 = vmatpush3.bf16.msra.mxu0 %v1440_v55 }
 0x309   :  { %1445 = vmatprep.subr.bf16.mxu0 %v1444_v58 }
 0x30c   :  { %1447 = vmatpush3.bf16.msra.mxu0 %v1444_v58 }
 0x30d   :  { %v1491_v22 = vpop.eup %1490  ;;  %1449 = vmatprep.subr.bf16.mxu0 %v1448_v61 }
 0x30e   :  { %v495_v24 = vmul.f32 %v1491_v22, %v489_v15  ;;  %v493_v25 = vmul.f32 %v1491_v22, %v487_v16  ;;  %v494_v26 = vmul.f32 %v1491_v22, %v488_v17  ;;  %v496_v27 = vmul.f32 %v1491_v22, %v490_v18  ;;  %v830_v16 = vld [vmem:[%s1972_s17 + $0x50] sm:$0xff]  ;;  %v831_v17 = vld [vmem:[%s1972_s17 + $0x58] sm:$0xff] }
 0x30f   :  { %v1472_v15 = vpack.c.bf16 %v829_v14, %v828_v13  ;;  %v1476_v18 = vpack.c.bf16 %v831_v17, %v830_v16  ;;  %v833_v16 = vld [vmem:[%s1972_s17 + $0x68] sm:$0xff] }
 0x310   :  { %v504_v29 = vmul.f32 %v942_v23, %v493_v25  ;;  %v505_v30 = vmul.f32 %v942_v23, %v494_v26  ;;  %v506_v31 = vmul.f32 %v942_v23, %v495_v24  ;;  %v507_v32 = vmul.f32 %v942_v23, %v496_v27  ;;  %1451 = vmatpush3.bf16.msra.mxu0 %v1448_v61  ;;  %v945_v61 = vld [vmem:[%s1974_s13] ss:$0 sm:$0xff] }
 0x311   :  { %1453 = vmatprep.subr.bf16.mxu0 %v1452_v0 }
 0x312   :  { %v515_v33 = vadd.f32 %v943_v28, %v504_v29  ;;  %v516_v34 = vadd.f32 %v943_v28, %v505_v30  ;;  %v517_v35 = vadd.f32 %v943_v28, %v506_v31  ;;  %v518_v38 = vadd.f32 %v943_v28, %v507_v32 }
 0x314   :  { %v519_v36 = vmax.f32 %v515_v33, 0.0  ;;  %v520_v37 = vmax.f32 %v516_v34, 0.0  ;;  %v521_v39 = vmax.f32 %v517_v35, 0.0  ;;  %v522_v40 = vmax.f32 %v518_v38, 0.0  ;;  %1455 = vmatpush3.bf16.msra.mxu0 %v1452_v0 }
 0x316   :  { %1214 = vmatprep.mubr.f32.mxu1 %v519_v36 }
 0x317   :  { %1215 = vmatmul.mubr.f32.vlgmr.msra.gmra.mrb[4].mxu1 %v520_v37 }
 0x318   :  { %1217 = vmatprep.mubr.f32.mxu1 %v521_v39  ;;  %1459 = vmatpush3.bf16.msra.mxu1 %v1456_v4 }
 0x319   :  { %1461 = vmatprep.subr.bf16.mxu1 %v1460_v6 }
 0x31b   :  { %1218 = vmatmul.mubr.f32.gmra.mrb[6].mxu1 %v522_v40 }
 0x31c   :  { %1463 = vmatpush3.bf16.msra.mxu1 %v1460_v6 }
 0x31d   :  { %1465 = vmatprep.subr.bf16.mxu1 %v1464_v9 }
 0x320   :  { %1467 = vmatpush3.bf16.msra.mxu1 %v1464_v9 }
 0x321   :  { %1469 = vmatprep.subr.bf16.mxu1 %v1468_v12 }
 0x324   :  { %1471 = vmatpush3.bf16.msra.mxu1 %v1468_v12 }
 0x325   :  { %1473 = vmatprep.subr.bf16.mxu1 %v1472_v15 }
 0x328   :  { %1475 = vmatpush3.bf16.msra.mxu1 %v1472_v15  ;;  %v832_v15 = vld [vmem:[%s1972_s17 + $0x60] sm:$0xff] }
 0x329   :  { %1477 = vmatprep.subr.bf16.mxu1 %v1476_v18  ;;  %v1480_v17 = vpack.c.bf16 %v833_v16, %v832_v15 }
 0x32c   :  { %1479 = vmatpush3.bf16.msra.mxu1 %v1476_v18  ;;  %v834_v18 = vld [vmem:[%s1972_s17 + $0x70] sm:$0xff] }
 0x32d   :  { %1481 = vmatprep.subr.bf16.mxu1 %v1480_v17 }
 0x330   :  { %1483 = vmatpush3.bf16.msra.mxu1 %v1480_v17 }
 0x3ea   :  { %v1216_v20 = vpop.f32.mrb[4].mxu1 }
 0x3eb   :  { %v618_v21 = vadd.f32 %v1216_v20, %v944_v19  ;;  %v612_v22 = vpop.f32.mrb[5].mxu1 }
 0x3ec   :  { %v613_v23 = vadd.f32 %v944_v19, %v612_v22 }
 0x3ed   :  { %v641_v24 = vmul.f32 %v618_v21, %v618_v21 }
 0x3ee   :  { %v631_v25 = vadd.f32 %v618_v21, %v613_v23  ;;  %v640_v26 = vmul.f32 %v613_v23, %v613_v23  ;;  %v1219_v27 = vpop.f32.mrb[6].mxu1 }
 0x3ef   :  { %v622_v28 = vpop.f32.mrb[7].mxu1  ;;  %v628_v30 = vadd.f32 %v1219_v27, %v944_v19 }
 0x3f0   :  { %v644_v29 = vadd.f32 %v641_v24, %v640_v26  ;;  %v623_v31 = vadd.f32 %v944_v19, %v622_v28  ;;  %v835_v19 = vld [vmem:[%s1972_s17 + $0x78] sm:$0xff] }
 0x3f1   :  { %v643_v34 = vmul.f32 %v628_v30, %v628_v30  ;;  %v1484_v20 = vpack.c.bf16 %v835_v19, %v834_v18 }
 0x3f2   :  { %v632_v32 = vadd.f32 %v631_v25, %v623_v31  ;;  %v642_v33 = vmul.f32 %v623_v31, %v623_v31 }
 0x3f3   :  { %1485 = vmatprep.subr.bf16.mxu1 %v1484_v20 }
 0x3f4   :  { %v633_v35 = vadd.f32 %v632_v32, %v628_v30  ;;  %v645_v36 = vadd.f32 %v644_v29, %v642_v33  ;;  %1487 = vmatpush3.bf16.msra.mxu1 %v1484_v20 }
 0x3f6   :  { %v634_v37 = vrot.slane %v633_v35, 4  ;;  %v646_v38 = vadd.f32 %v645_v36, %v643_v34 }
 0x3f8   :  { %v635_v39 = vadd.f32 %v634_v37, %v633_v35  ;;  %v647_v40 = vrot.slane %v646_v38, 4 }
 0x3fa   :  { %v636_v41 = vrot.slane %v635_v39, 2  ;;  %v648_v42 = vadd.f32 %v647_v40, %v646_v38 }
 0x3fc   :  { %v637_v43 = vadd.f32 %v636_v41, %v635_v39  ;;  %v649_v44 = vrot.slane %v648_v42, 2 }
 0x3fe   :  { %v638_v45 = vrot.slane %v637_v43, 1  ;;  %v650_v46 = vadd.f32 %v649_v44, %v648_v42 }
 0x400   :  { %v639_v47 = vadd.f32 %v638_v45, %v637_v43  ;;  %v651_v48 = vrot.slane %v650_v46, 1 }
 0x402   :  { %v652_v49 = vadd.f32 %v651_v48, %v650_v46  ;;  %v653_v50 = vmul.f32 0.03125, %v639_v47 }
 0x404   :  { %v654_v51 = vmul.f32 0.03125, %v652_v49  ;;  %v655_v52 = vmul.f32 %v653_v50, %v653_v50  ;;  %v660_v53 = vsub.f32 %v623_v31, %v653_v50  ;;  %v658_v54 = vsub.f32 %v613_v23, %v653_v50 }
 0x405   :  { %v659_v55 = vsub.f32 %v618_v21, %v653_v50  ;;  %v661_v56 = vsub.f32 %v628_v30, %v653_v50  ;;  %v947_v21 = vld [vmem:[%s1976_s16] ss:$0 sm:$0xff]  ;;  %v815_v30 = vstv %s1977_s18 }
 0x406   :  { %v656_v57 = vsub.f32 %v654_v51, %v655_v52 }
 0x408   :  { %v657_v58 = vmax.f32 %v656_v57, 0.0 }
 0x40a   :  { %v662_v59 = vadd.f32 1e-05, %v657_v58 }
 0x40c   :  { %1492 = vrsqrt.f32 %v662_v59 }
 0x416   :  { %v1493_v60 = vpop.eup %1492 }
 0x417   :  { %v666_v62 = vmul.f32 %v1493_v60, %v660_v53  ;;  %v664_v63 = vmul.f32 %v1493_v60, %v658_v54  ;;  %v665_v0 = vmul.f32 %v1493_v60, %v659_v55  ;;  %v667_v1 = vmul.f32 %v1493_v60, %v661_v56 }
 0x419   :  { %v675_v3 = vmul.f32 %v945_v61, %v664_v63  ;;  %v676_v4 = vmul.f32 %v945_v61, %v665_v0  ;;  %v677_v5 = vmul.f32 %v945_v61, %v666_v62  ;;  %v678_v6 = vmul.f32 %v945_v61, %v667_v1 }
 0x41b   :  { %v686_v7 = vadd.f32 %v946_v2, %v675_v3  ;;  %v687_v8 = vadd.f32 %v946_v2, %v676_v4  ;;  %v688_v9 = vadd.f32 %v946_v2, %v677_v5  ;;  %v689_v12 = vadd.f32 %v946_v2, %v678_v6 }
 0x41d   :  { %v690_v10 = vmax.f32 %v686_v7, 0.0  ;;  %v691_v11 = vmax.f32 %v687_v8, 0.0  ;;  %v692_v13 = vmax.f32 %v688_v9, 0.0  ;;  %v693_v14 = vmax.f32 %v689_v12, 0.0 }
 0x41f   :  { %1252 = vmatprep.mubr.f32.mxu0 %v690_v10 }
 0x420   :  { %1253 = vmatmul.mubr.f32.vlgmr.msra.gmra.mrb[8].mxu0 %v691_v11 }
 0x421   :  { %1255 = vmatprep.mubr.f32.mxu0 %v692_v13 }
 0x424   :  { %1256 = vmatmul.mubr.f32.gmra.mrb[10].mxu0 %v693_v14 }
 0x4f3   :  { %v1254_v22 = vpop.f32.mrb[8].mxu0 }
 0x4f4   :  { %v789_v23 = vadd.f32 %v1254_v22, %v947_v21  ;;  %v783_v24 = vpop.f32.mrb[9].mxu0 }
 0x4f5   :  { %v784_v25 = vadd.f32 %v947_v21, %v783_v24 }
 0x4f6   :  { %v803_v26 = vsub.f32 %v789_v23, %v789_v23 }
 0x4f7   :  { %v802_v27 = vsub.f32 %v784_v25, %v784_v25  ;;  %v1257_v28 = vpop.f32.mrb[10].mxu0 }
 0x4f8   :  { %v807_v29 = vadd.f32 1.0, %v803_v26  ;;  %v799_v31 = vadd.f32 %v1257_v28, %v947_v21  ;;  %v793_v32 = vpop.f32.mrb[11].mxu0 }
 0x4f9   :  { %v806_v33 = vadd.f32 1.0, %v802_v27  ;;  %v794_v34 = vadd.f32 %v947_v21, %v793_v32 }
 0x4fa   :  { %811 = vst [vmem:[%s1978_s20 + $0x8] sm:$0xff] %v807_v29  ;;  %v805_v35 = vsub.f32 %v799_v31, %v799_v31  ;;  %v817_v38 = vadd.f32 %v815_v30, %v807_v29 }
 0x4fb   :  { %810 = vst [vmem:[%s1978_s20] sm:$0xff] %v806_v33  ;;  %v816_v36 = vadd.f32 %v815_v30, %v806_v33  ;;  %v804_v37 = vsub.f32 %v794_v34, %v794_v34 }
 0x4fc   :  { %v809_v39 = vadd.f32 1.0, %v805_v35 }
 0x4fd   :  { %v808_v40 = vadd.f32 1.0, %v804_v37  ;;  %1290 = vmatprep.mubr.f32.mxu1 %v816_v36 }
 0x4fe   :  { %813 = vst [vmem:[%s1978_s20 + $0x18] sm:$0xff] %v809_v39  ;;  %1291 = vmatmul.mubr.f32.vlgmr.msra.gmra.mrb[8].mxu1 %v817_v38  ;;  %v819_v42 = vadd.f32 %v815_v30, %v809_v39 }
 0x4ff   :  { %812 = vst [vmem:[%s1978_s20 + $0x10] sm:$0xff] %v808_v40  ;;  %v818_v41 = vadd.f32 %v815_v30, %v808_v40 }
 0x501   :  { %1293 = vmatprep.mubr.f32.mxu1 %v818_v41 }
 0x502   :  { %1294 = vmatmul.mubr.f32.gmra.mrb[10].mxu1 %v819_v42 }
 0x5d1   :  { %v1292_v43 = vpop.f32.mrb[8].mxu1 }
 0x5d2   :  { %v922_v44 = vsub.f32 %v1292_v43, %v815_v30  ;;  %v902_v45 = vpop.f32.mrb[9].mxu1 }
 0x5d3   :  { %v921_v46 = vsub.f32 %v902_v45, %v815_v30 }
 0x5d4   :  { %926 = vst [vmem:[%s1979_s19 + $0x8] sm:$0xff] %v922_v44 }
 0x5d5   :  { %925 = vst [vmem:[%s1979_s19] sm:$0xff] %v921_v46  ;;  %v1295_v47 = vpop.f32.mrb[10].mxu1 }
 0x5d6   :  { %v924_v48 = vsub.f32 %v1295_v47, %v815_v30  ;;  %v912_v49 = vpop.f32.mrb[11].mxu1 }
 0x5d7   :  { %v923_v50 = vsub.f32 %v912_v49, %v815_v30 }
 0x5d8   :  { %928 = vst [vmem:[%s1979_s19 + $0x18] sm:$0xff] %v924_v48 }
 0x5d9   :  { %927 = vst [vmem:[%s1979_s19 + $0x10] sm:$0xff] %v923_v50 }

</bundles_post_ra>
